<compile_context>
chip_gen: v5e
topology: v5e:2x2
jax: 0.10.0
libtpu: 0.0.40
codegen_flags: <defaults>
</compile_context>

<pallas_src>
import functools
import math

import jax
import jax.numpy as jnp
from jax import lax
from jax.experimental import pallas as pl
from jax.experimental.pallas import tpu as pltpu

LN_EPS = 1e-5                       # torch.nn.LayerNorm default
VMEM_LIMIT = 32 * 1024 * 1024       # explicit scoped-VMEM budget (fits v5e/v6e/v7x)
_GELU_C = math.sqrt(2.0 / math.pi)


def _gelu_tanh(x):
    # TODO(synk): nn.GELU() defaults to the exact erf formulation; the tanh
    # approximation is used here (and in the pure-JAX reference) because erf
    # is not a guaranteed Mosaic lowering.  Max deviation ~3e-4.
    return 0.5 * x * (1.0 + jnp.tanh(_GELU_C * (x + 0.044715 * x * x * x)))


# ----------------------------------------------------------------------------
# Kernel 1: fused LayerNorm + Linear  (used for LN1 + QKV projection)
# ----------------------------------------------------------------------------
def _ln_linear_kernel(x_ref, g_ref, b_ref, w_ref, wb_ref, o_ref):
    x = x_ref[...]                                        # (TM, D) f32
    mu = jnp.mean(x, axis=-1, keepdims=True)
    xc = x - mu
    var = jnp.mean(xc * xc, axis=-1, keepdims=True)
    xn = xc * lax.rsqrt(var + LN_EPS) * g_ref[...] + b_ref[...]
    y = jnp.dot(xn, w_ref[...], preferred_element_type=jnp.float32) + wb_ref[...]
    o_ref[...] = y.astype(o_ref.dtype)


def ln_linear(x2d, gamma, beta, w, b, *, tile_m=128):
    R, D = x2d.shape
    F = w.shape[1]
    assert R % tile_m == 0
    return pl.pallas_call(
        _ln_linear_kernel,
        out_shape=jax.ShapeDtypeStruct((R, F), x2d.dtype),
        grid_spec=pltpu.PrefetchScalarGridSpec(
            num_scalar_prefetch=0,
            grid=(R // tile_m,),
            in_specs=[
                pl.BlockSpec((tile_m, D), lambda i: (i, 0)),   # x rows
                pl.BlockSpec((1, D), lambda i: (0, 0)),        # gamma
                pl.BlockSpec((1, D), lambda i: (0, 0)),        # beta
                pl.BlockSpec((D, F), lambda i: (0, 0)),        # W
                pl.BlockSpec((1, F), lambda i: (0, 0)),        # b
            ],
            out_specs=pl.BlockSpec((tile_m, F), lambda i: (i, 0)),
        ),
        compiler_params=pltpu.CompilerParams(
            dimension_semantics=("parallel",),
            vmem_limit_bytes=VMEM_LIMIT),
    )(x2d, gamma, beta, w, b)


# ----------------------------------------------------------------------------
# Kernel 2: flash attention (online softmax, no N x N materialization)
# ----------------------------------------------------------------------------
def _flash_attn_kernel(scale, q_ref, k_ref, v_ref, o_ref, m_sc, l_sc, acc_sc):
    ki = pl.program_id(2)

    @pl.when(ki == 0)
    def _():
        m_sc[...] = jnp.full(m_sc.shape, -jnp.inf, dtype=m_sc.dtype)
        l_sc[...] = jnp.zeros(l_sc.shape, l_sc.dtype)
        acc_sc[...] = jnp.zeros(acc_sc.shape, acc_sc.dtype)

    q = q_ref[0] * scale                                   # (TQ, HD)
    k = k_ref[0]                                           # (TK, HD)
    v = v_ref[0]                                           # (TK, HD)

    # scores: contract last axes directly (no explicit transpose of k).
    s = lax.dot_general(q, k, (((1,), (1,)), ((), ())),
                        preferred_element_type=jnp.float32)  # (TQ, TK)

    m_prev = m_sc[...]
    m_new = jnp.maximum(m_prev, jnp.max(s, axis=-1, keepdims=True))
    alpha = jnp.exp(m_prev - m_new)
    p = jnp.exp(s - m_new)
    l_sc[...] = alpha * l_sc[...] + jnp.sum(p, axis=-1, keepdims=True)
    acc_sc[...] = alpha * acc_sc[...] + jnp.dot(
        p, v, preferred_element_type=jnp.float32)
    m_sc[...] = m_new

    @pl.when(ki == pl.num_programs(2) - 1)
    def _():
        inv_l = pl.reciprocal(l_sc[...], approx=True)       # EUP reciprocal
        o_ref[0] = (acc_sc[...] * inv_l).astype(o_ref.dtype)


def flash_attention(q, k, v, scale, *, tile_q=128, tile_k=128):
    BH, N, HD = q.shape
    assert N % tile_q == 0 and N % tile_k == 0
    kern = functools.partial(_flash_attn_kernel, scale)
    return pl.pallas_call(
        kern,
        out_shape=jax.ShapeDtypeStruct((BH, N, HD), q.dtype),
        grid_spec=pltpu.PrefetchScalarGridSpec(
            num_scalar_prefetch=0,
            grid=(BH, N // tile_q, N // tile_k),
            in_specs=[
                pl.BlockSpec((1, tile_q, HD), lambda b, qi, ki: (b, qi, 0)),
                pl.BlockSpec((1, tile_k, HD), lambda b, qi, ki: (b, ki, 0)),
                pl.BlockSpec((1, tile_k, HD), lambda b, qi, ki: (b, ki, 0)),
            ],
            out_specs=pl.BlockSpec((1, tile_q, HD), lambda b, qi, ki: (b, qi, 0)),
            scratch_shapes=[
                pltpu.VMEM((tile_q, 1), jnp.float32),   # running max m
                pltpu.VMEM((tile_q, 1), jnp.float32),   # running denom l
                pltpu.VMEM((tile_q, HD), jnp.float32),  # running numerator acc
            ]),
        compiler_params=pltpu.CompilerParams(
            dimension_semantics=("parallel", "parallel", "arbitrary"),
            vmem_limit_bytes=VMEM_LIMIT),
    )(q, k, v)


# ----------------------------------------------------------------------------
# Kernel 3: out-projection + residual + LayerNorm2 + MLP(GELU) + residual
# ----------------------------------------------------------------------------
def _proj_mlp_kernel(x_ref, a_ref, wp_ref, bp_ref, g2_ref, be2_ref,
                     w1_ref, wb1_ref, w2_ref, wb2_ref, o_ref):
    x = x_ref[...]                                         # (TM, D) residual
    a = a_ref[...]                                         # (TM, D) attn out
    h = x + jnp.dot(a, wp_ref[...],
                    preferred_element_type=jnp.float32) + bp_ref[...]

    mu = jnp.mean(h, axis=-1, keepdims=True)
    hc = h - mu
    var = jnp.mean(hc * hc, axis=-1, keepdims=True)
    hn = hc * lax.rsqrt(var + LN_EPS) * g2_ref[...] + be2_ref[...]

    z = jnp.dot(hn, w1_ref[...],
                preferred_element_type=jnp.float32) + wb1_ref[...]
    z = _gelu_tanh(z)
    y = h + jnp.dot(z, w2_ref[...],
                    preferred_element_type=jnp.float32) + wb2_ref[...]
    o_ref[...] = y.astype(o_ref.dtype)


def proj_mlp(x2d, attn2d, w_proj, b_proj, gamma2, beta2,
             w_fc1, b_fc1, w_fc2, b_fc2, *, tile_m=128):
    R, D = x2d.shape
    HID = w_fc1.shape[1]
    assert R % tile_m == 0
    const = lambda i: (0, 0)
    return pl.pallas_call(
        _proj_mlp_kernel,
        out_shape=jax.ShapeDtypeStruct((R, D), x2d.dtype),
        grid_spec=pltpu.PrefetchScalarGridSpec(
            num_scalar_prefetch=0,
            grid=(R // tile_m,),
            in_specs=[
                pl.BlockSpec((tile_m, D), lambda i: (i, 0)),   # x (residual)
                pl.BlockSpec((tile_m, D), lambda i: (i, 0)),   # attn output
                pl.BlockSpec((D, D), const),                   # W_proj
                pl.BlockSpec((1, D), const),                   # b_proj
                pl.BlockSpec((1, D), const),                   # gamma2
                pl.BlockSpec((1, D), const),                   # beta2
                pl.BlockSpec((D, HID), const),                 # W_fc1
                pl.BlockSpec((1, HID), const),                 # b_fc1
                pl.BlockSpec((HID, D), const),                 # W_fc2
                pl.BlockSpec((1, D), const),                   # b_fc2
            ],
            out_specs=pl.BlockSpec((tile_m, D), lambda i: (i, 0)),
        ),
        compiler_params=pltpu.CompilerParams(
            dimension_semantics=("parallel",),
            vmem_limit_bytes=VMEM_LIMIT),
    )(x2d, attn2d, w_proj, b_proj, gamma2, beta2, w_fc1, b_fc1, w_fc2, b_fc2)


# ----------------------------------------------------------------------------
# Block forward = three fused kernels + XLA layout plumbing in between
# ----------------------------------------------------------------------------
def block_forward(x, params, *, num_heads, tile_m=128, tile_q=128, tile_k=128):
    """x: (B, N, D) float32.  Default Block path: no skip, no cross-attn,
    no MVAttention, dropout p=0 (identity)."""
    B, N, D = x.shape
    H = num_heads
    assert D % H == 0
    hd = D // H
    scale = float(hd) ** (-0.5)
    R = B * N
    x2 = x.reshape(R, D)

    # LN1 + QKV projection, batch folded into rows.
    qkv = ln_linear(x2, params["ln1_g"], params["ln1_b"],
                    params["w_qkv"], params["b_qkv"], tile_m=tile_m)  # (R, 3D)

    # Split into per-head q/k/v, same layout as 'b n (k3 h d) -> k3 b h n d'.
    qkv = qkv.reshape(B, N, 3, H, hd)
    q = qkv[:, :, 0].transpose(0, 2, 1, 3).reshape(B * H, N, hd)
    k = qkv[:, :, 1].transpose(0, 2, 1, 3).reshape(B * H, N, hd)
    v = qkv[:, :, 2].transpose(0, 2, 1, 3).reshape(B * H, N, hd)

    attn = flash_attention(q, k, v, scale, tile_q=tile_q, tile_k=tile_k)

    # Merge heads back: (B*H, N, hd) -> (B*N, D).
    attn2 = attn.reshape(B, H, N, hd).transpose(0, 2, 1, 3).reshape(R, D)

    out = proj_mlp(x2, attn2, params["w_proj"], params["b_proj"],
                   params["ln2_g"], params["ln2_b"],
                   params["w_fc1"], params["b_fc1"],
                   params["w_fc2"], params["b_fc2"], tile_m=tile_m)
    return out.reshape(B, N, D)


# ----------------------------------------------------------------------------
# Pure-JAX reference mirroring the PyTorch forward
# ----------------------------------------------------------------------------
def reference_block(x, params, *, num_heads):
    B, N, D = x.shape
    H = num_heads
    hd = D // H
    scale = float(hd) ** (-0.5)

    def ln(t, g, b):
        mu = jnp.mean(t, axis=-1, keepdims=True)
        var = jnp.mean((t - mu) ** 2, axis=-1, keepdims=True)
        return (t - mu) / jnp.sqrt(var + LN_EPS) * g + b

    xn = ln(x, params["ln1_g"], params["ln1_b"])
    qkv = xn @ params["w_qkv"] + params["b_qkv"]
    qkv = qkv.reshape(B, N, 3, H, hd).transpose(2, 0, 3, 1, 4)  # (3,B,H,N,hd)
    q, k, v = qkv[0], qkv[1], qkv[2]
    attn = jnp.einsum("bhqd,bhkd->bhqk", q, k) * scale
    attn = jax.nn.softmax(attn, axis=-1)
    o = jnp.einsum("bhqk,bhkd->bhqd", attn, v)
    o = o.transpose(0, 2, 1, 3).reshape(B, N, D)
    h = x + o @ params["w_proj"] + params["b_proj"]
    hn = ln(h, params["ln2_g"], params["ln2_b"])
    z = _gelu_tanh(hn @ params["w_fc1"] + params["b_fc1"])
    return h + z @ params["w_fc2"] + params["b_fc2"]


if __name__ == "__main__":
    # Small but lane-dense demo shapes: D, 3D, head_dim, hidden all % 128 == 0.
    B, N, D = 2, 256, 256
    H = 2                       # head_dim = 128
    HID = 4 * D                 # mlp_ratio = 4.0

    key = jax.random.PRNGKey(0)
    ks = jax.random.split(key, 11)

    x = jax.random.normal(ks[0], (B, N, D), dtype=jnp.float32)

    def lin_w(k, fan_in, shape):
        return jax.random.normal(k, shape, dtype=jnp.float32) / math.sqrt(fan_in)

    params = dict(
        ln1_g=1.0 + 0.1 * jax.random.normal(ks[1], (1, D), dtype=jnp.float32),
        ln1_b=0.1 * jax.random.normal(ks[2], (1, D), dtype=jnp.float32),
        w_qkv=lin_w(ks[3], D, (D, 3 * D)),            # qkv_bias=True variant
        b_qkv=0.02 * jax.random.normal(ks[4], (1, 3 * D), dtype=jnp.float32),
        w_proj=lin_w(ks[5], D, (D, D)),
        b_proj=0.02 * jax.random.normal(ks[6], (1, D), dtype=jnp.float32),
        ln2_g=1.0 + 0.1 * jax.random.normal(ks[7], (1, D), dtype=jnp.float32),
        ln2_b=0.1 * jax.random.normal(ks[8], (1, D), dtype=jnp.float32),
        w_fc1=lin_w(ks[9], D, (D, HID)),
        b_fc1=jnp.zeros((1, HID), dtype=jnp.float32),
        w_fc2=lin_w(ks[10], HID, (HID, D)),
        b_fc2=jnp.zeros((1, D), dtype=jnp.float32),
    )

    # TODO(synk): skip_linear / cross-attn / MVAttention branches and dropout
    # (p=0) of the PyTorch Block are not exercised in the default forward path
    # and are not implemented here.

    out = block_forward(x, params, num_heads=H)
    out = jax.block_until_ready(out)

    ref = reference_block(x, params, num_heads=H)
    err = float(jnp.max(jnp.abs(out - ref)))
    assert out.shape == (B, N, D)
    assert jnp.allclose(out, ref, atol=5e-3, rtol=5e-3), f"max abs err {err}"

    print("KERNEL_OK")
</pallas_src>

<mosaic_0001>
module attributes {stable_mosaic.version = 11 : i64} {
  func.func @_ln_linear_kernel(%arg0: i32, %arg1: memref<128x256xf32, #tpu.memory_space<vmem>>, %arg2: memref<1x256xf32, #tpu.memory_space<vmem>>, %arg3: memref<1x256xf32, #tpu.memory_space<vmem>>, %arg4: memref<256x768xf32, #tpu.memory_space<vmem>>, %arg5: memref<1x768xf32, #tpu.memory_space<vmem>>, %arg6: memref<128x768xf32, #tpu.memory_space<vmem>>) attributes {dimension_semantics = [#tpu.dimension_semantics<parallel>], iteration_bounds = array<i64: 4>, scalar_prefetch = 0 : i64, scratch_operands = 0 : i64, tpu.core_type = #tpu.core_type<tc>, window_params = [{transform_indices = @transform_0, window_bounds = array<i64: 128, 256>}, {pipeline_mode = #tpu.pipeline_mode<synchronous>, transform_indices = @transform_1, window_bounds = array<i64: 1, 256>}, {pipeline_mode = #tpu.pipeline_mode<synchronous>, transform_indices = @transform_2, window_bounds = array<i64: 1, 256>}, {pipeline_mode = #tpu.pipeline_mode<synchronous>, transform_indices = @transform_3, window_bounds = array<i64: 256, 768>}, {pipeline_mode = #tpu.pipeline_mode<synchronous>, transform_indices = @transform_4, window_bounds = array<i64: 1, 768>}, {transform_indices = @transform_5, window_bounds = array<i64: 128, 768>}]} {
    %c0 = arith.constant 0 : index
    %c0_0 = arith.constant 0 : index
    %0 = vector.load %arg1[%c0, %c0_0] : memref<128x256xf32, #tpu.memory_space<vmem>>, vector<128x256xf32>
    %cst = arith.constant dense<0.000000e+00> : vector<128xf32>
    %1 = vector.multi_reduction <add>, %0, %cst [1] : vector<128x256xf32> to vector<128xf32>
    %2 = vector.shape_cast %1 : vector<128xf32> to vector<128x1xf32>
    %cst_1 = arith.constant 2.560000e+02 : f32
    %3 = vector.broadcast %cst_1 : f32 to vector<128x1xf32>
    %4 = arith.divf %2, %3 : vector<128x1xf32>
    %5 = vector.broadcast %4 : vector<128x1xf32> to vector<128x256xf32>
    %6 = arith.subf %0, %5 : vector<128x256xf32>
    %7 = arith.mulf %6, %6 : vector<128x256xf32>
    %cst_2 = arith.constant dense<0.000000e+00> : vector<128xf32>
    %8 = vector.multi_reduction <add>, %7, %cst_2 [1] : vector<128x256xf32> to vector<128xf32>
    %9 = vector.shape_cast %8 : vector<128xf32> to vector<128x1xf32>
    %cst_3 = arith.constant 2.560000e+02 : f32
    %10 = vector.broadcast %cst_3 : f32 to vector<128x1xf32>
    %11 = arith.divf %9, %10 : vector<128x1xf32>
    %cst_4 = arith.constant 9.99999974E-6 : f32
    %12 = vector.broadcast %cst_4 : f32 to vector<128x1xf32>
    %13 = arith.addf %11, %12 : vector<128x1xf32>
    %14 = math.rsqrt %13 : vector<128x1xf32>
    %15 = vector.broadcast %14 : vector<128x1xf32> to vector<128x256xf32>
    %16 = arith.mulf %6, %15 : vector<128x256xf32>
    %c0_5 = arith.constant 0 : index
    %c0_6 = arith.constant 0 : index
    %17 = vector.load %arg2[%c0_5, %c0_6] : memref<1x256xf32, #tpu.memory_space<vmem>>, vector<1x256xf32>
    %18 = vector.broadcast %17 : vector<1x256xf32> to vector<128x256xf32>
    %19 = arith.mulf %16, %18 : vector<128x256xf32>
    %c0_7 = arith.constant 0 : index
    %c0_8 = arith.constant 0 : index
    %20 = vector.load %arg3[%c0_7, %c0_8] : memref<1x256xf32, #tpu.memory_space<vmem>>, vector<1x256xf32>
    %21 = vector.broadcast %20 : vector<1x256xf32> to vector<128x256xf32>
    %22 = arith.addf %19, %21 : vector<128x256xf32>
    %c0_9 = arith.constant 0 : index
    %c0_10 = arith.constant 0 : index
    %23 = vector.load %arg4[%c0_9, %c0_10] : memref<256x768xf32, #tpu.memory_space<vmem>>, vector<256x768xf32>
    %cst_11 = arith.constant dense<0.000000e+00> : vector<128x768xf32>
    %24 = tpu.matmul %22, %23, %cst_11 {dimension_numbers = #tpu.dot_dimension_numbers<[1], [0], [0], [1], [0, 0, 1, 1], [], []>} : vector<128x256xf32>, vector<256x768xf32>, vector<128x768xf32> -> vector<128x768xf32>
    %c0_12 = arith.constant 0 : index
    %c0_13 = arith.constant 0 : index
    %25 = vector.load %arg5[%c0_12, %c0_13] : memref<1x768xf32, #tpu.memory_space<vmem>>, vector<1x768xf32>
    %26 = vector.broadcast %25 : vector<1x768xf32> to vector<128x768xf32>
    %27 = arith.addf %24, %26 : vector<128x768xf32>
    %c0_14 = arith.constant 0 : index
    %c0_15 = arith.constant 0 : index
    %28 = vector.load %arg6[%c0_14, %c0_15] : memref<128x768xf32, #tpu.memory_space<vmem>>, vector<128x768xf32>
    tpu.vector_store %arg6[%c0_14, %c0_15], %27 {strides = array<i32>} : memref<128x768xf32, #tpu.memory_space<vmem>>, vector<128x768xf32>,
    return
  }
  func.func @transform_0(%arg0: i32) -> (i32, i32) {
    %c0_i32 = arith.constant 0 : i32
    %c0_i32_0 = arith.constant 0 : i32
    return %arg0, %c0_i32 : i32, i32
  }
  func.func @transform_1(%arg0: i32) -> (i32, i32) {
    %c0_i32 = arith.constant 0 : i32
    %c0_i32_0 = arith.constant 0 : i32
    %c0_i32_1 = arith.constant 0 : i32
    return %c0_i32, %c0_i32_0 : i32, i32
  }
  func.func @transform_2(%arg0: i32) -> (i32, i32) {
    %c0_i32 = arith.constant 0 : i32
    %c0_i32_0 = arith.constant 0 : i32
    %c0_i32_1 = arith.constant 0 : i32
    return %c0_i32, %c0_i32_0 : i32, i32
  }
  func.func @transform_3(%arg0: i32) -> (i32, i32) {
    %c0_i32 = arith.constant 0 : i32
    %c0_i32_0 = arith.constant 0 : i32
    %c0_i32_1 = arith.constant 0 : i32
    return %c0_i32, %c0_i32_0 : i32, i32
  }
  func.func @transform_4(%arg0: i32) -> (i32, i32) {
    %c0_i32 = arith.constant 0 : i32
    %c0_i32_0 = arith.constant 0 : i32
    %c0_i32_1 = arith.constant 0 : i32
    return %c0_i32, %c0_i32_0 : i32, i32
  }
  func.func @transform_5(%arg0: i32) -> (i32, i32) {
    %c0_i32 = arith.constant 0 : i32
    %c0_i32_0 = arith.constant 0 : i32
    return %arg0, %c0_i32 : i32, i32
  }
}

</mosaic_0001>

<bundles_post_ra>
// kernel: tpu_custom_call.1
= control target key start
LH: loop header
LB: loop body
LE: loop exit
PB: predicated region body
PF: predicated region fallthrough
CT: control target
= control target key end

     0   :  { %10 = vsyncpa [#allocation3], 0  ;;  %s3652_s0 = inlined_call_operand.hbm [shape: f32[512,256], index: 0, kind: input, shape index: {}]   ;;  %s3653_s1 = inlined_call_operand.hbm [shape: f32[1,256], index: 1, kind: input, shape index: {}]   ;;  %s3654_s2 = inlined_call_operand.hbm [shape: f32[1,256], index: 2, kind: input, shape index: {}]   ;;  %s3655_s3 = inlined_call_operand.hbm [shape: f32[256,768], index: 3, kind: input, shape index: {}]   ;;  %s3656_s4 = inlined_call_operand.hbm [shape: f32[1,768], index: 4, kind: input, shape index: {}]   ;;  %s3657_s5 = inlined_call_operand.hbm [shape: f32[512,768], index: 5, kind: output, shape index: {}]  }
   0x1   :  { %12 = vsyncpa [#allocation3 + $0x1], 0 }
   0x2   :  { %13 = vsyncpa [#allocation6], 0 }
   0x3   :  { %14 = vsyncpa [#allocation9], 0 }
   0x4   :  { %15 = vsyncpa [#allocation4], 0 }
   0x5   :  { %17 = vsyncpa [#allocation4 + $0x1], 0  ;;  %s2455_s18 = smov 0   ;;  %s2457_s19 = smov 0  }
   0x6   :  { %s2459_s20 = smov 0   ;;  %s2461_s21 = smov 0  }
   0x7 LB: > { %s2476_s22 = sadd.s32 4294967295, %s2412_s21   ;;  %s2033_s23 = sadd.s32 4294967294, %s2412_s21   ;;  %s2412_s21 = sphi %s2461_s21, %s3675_s21   ;;  %s2408_s20 = sphi %s2459_s20, %s3674_s20   ;;  %s2404_s19 = sphi %s2457_s19, %s3673_s19   ;;  %s2400_s18 = sphi %s2455_s18, %s3672_s18  }
   0x8   : > { %p43_p0 = scmp.ne.s32.totalorder %s2404_s19, %s2400_s18  ;;  %p44_p1 = scmp.eq.s32.totalorder %s2476_s22, 0 }
   0x9   : > { %p151_p2 = scmp.eq.s32.totalorder %s2476_s22, 3  ;;  %p157_p3 = scmp.eq.s32.totalorder %s2033_s23, 3 }
   0xa   : > { %p2485_p4 = por %p44_p1, %p43_p0  ;;  %p2034_p5 = scmp.ge.s32.totalorder %s2412_s21, 1 }
   0xb   : > { %p2490_p6 = por %p157_p3, %p43_p0  ;;  %p164_p7 = scmp.lt.s32.totalorder %s2412_s21, 5 }
   0xc   : > { %s176_s28 = sshll.u32 %s3653_s1, 4  ;;  %s2414_s30 = smov [#allocation5]   ;;  %s177_s28 = int_to_ptr.hbm [resolvable:$true] %s176_s28 }
   0xd   : > { %p2498_p8 = pnand %p2034_p5, %p164_p7  ;;  %s178_s6 = sshll.u32 %s2414_s30, 4  ;;  %s179_s6 = int_to_ptr.vmem [resolvable:$true] %s178_s6 }
   0xe   : > { %s199_s9 = sshll.u32 %s3655_s3, 4  ;;  %s2415_s11 = smov [#allocation8]   ;;  %s200_s9 = int_to_ptr.hbm [resolvable:$true] %s199_s9 }
   0xf   : > { %p2079_p9 = pneg %p2498_p8  ;;  %s201_s12 = sshll.u32 %s2415_s11, 4  ;;  %s202_s12 = int_to_ptr.vmem [resolvable:$true] %s201_s12 }
  0x10   : > { %s2416_s13 = smov 768   ;;  %s2417_s14 = smov 48  }
  0x11   : > { %p2509_p10 = pnand %p2079_p9, %p44_p1  ;;  %s188_s17 = sshll.u32 %s3654_s2, 4  ;;  %s189_s17 = int_to_ptr.hbm [resolvable:$true] %s188_s17 }
  0x12   : > { %s2418_s23 = smov [#allocation7]   ;;  %s214_s30 = sshll.u32 %s3656_s4, 4  ;;  %s215_s30 = int_to_ptr.hbm [resolvable:$true] %s214_s30 }
  0x13   : > { %2082 = dma.hbm_to_vmem [thread:$0]  (!%p2509_p10), %s177_s28, 32, %s179_s6, [#allocation6]  }
  0x14   : > { %2088 = dma.hbm_to_vmem [thread:$0]  (!%p2509_p10), %s200_s9, 24576, %s202_s12, [#allocation9], %s2416_s13, %s2416_s13, %s2417_s14  }
  0x15   : > { %s190_s26 = sshll.u32 %s2418_s23, 4  ;;  %s2419_s6 = smov [#allocation10]   ;;  %s191_s26 = int_to_ptr.vmem [resolvable:$true] %s190_s26 }
  0x16   : > { %2085 = dma.hbm_to_vmem [thread:$0]  (!%p2509_p10), %s189_s17, 32, %s191_s26, [#allocation6]  }
  0x17   : > { %s216_s7 = sshll.u32 %s2419_s6, 4  ;;  %s2528_s8 = sadd.s32 1, %s2412_s21   ;;  %s217_s7 = int_to_ptr.vmem [resolvable:$true] %s216_s7 }
  0x18   : > { %2091 = dma.hbm_to_vmem [thread:$0]  (!%p2509_p10), %s215_s30, 96, %s217_s7, [#allocation9]  }
  0x19   : > { %s30_s9 = sadd.s32 1, %s2408_s20  ;;  %s27_s11 = ssub.s32 %s2412_s21, %s2528_s8 }
  0x1a   : > { %p37_p11 = scmp.ne.s32.totalorder %s2408_s20, %s2404_s19  ;;  %p28_p12 = scmp.eq.s32.totalorder %s27_s11, 0 }
  0x1b   : > { %p38_p13 = scmp.eq.s32.totalorder %s2412_s21, 0  ;;  %p2104_p3 = scmp.lt.s32.totalorder %s2412_s21, 4 }
  0x1c   : > { %p2538_p0 = por %p151_p2, %p37_p11  ;;  %s227_s14 = sand.u32 1, %s2408_s20  }
  0x1d   : > { %s2544_s13 = scalar_select %p28_p12, %s2408_s20, %s30_s9  }
  0x1e   : > { %p39_p5 = por %p38_p13, %p37_p11  ;;  %s2040_s10 = sshll.u32 %s227_s14, 8 }
  0x1f   : > { %s2056_s15 = sshll.u32 %s2412_s21, 8  ;;  %s231_s26 = scalar_lea.vmem [#allocation2], %s2040_s10 }
  0x20   : > { %s237_s23 = scalar_lea.hbm %s3652_s0, %s2056_s15  ;;  %s240_s27 = sshll.u32 %s231_s26, 4  ;;  %s241_s27 = int_to_ptr.vmem [resolvable:$true] %s240_s27 }
  0x21   : > { %s238_s28 = sshll.u32 %s237_s23, 4  ;;  %p2551_p2 = pnand %p2104_p3, %p39_p5  ;;  %s239_s28 = int_to_ptr.hbm [resolvable:$true] %s238_s28 }
  0x22   : > { %s228_s6 = scalar_lea.sflag [#allocation3], %s227_s14  ;;  %s2308_s7 = sshra.s32 %s239_s28, 4  ;;  %s2309_s7 = int_to_ptr.hbm [resolvable:$true] %s2308_s7 }
  0x23   : > { %s2310_s9 = scalar_lea.hbm %s2309_s7, 256  ;;  %p2312_p9 = pneg %p2551_p2 }
  0x24   : > { %p2311_p7 = scmp.ne.s32.totalorder %s2309_s7, %s2310_s9  ;;  %s2315_s15 = scalar_lea.hbm %s3652_s0, 1024 }
  0x25   : > { %p2316_p12 = scmp.lt.s32.totalorder %s2309_s7, %s3652_s0  ;;  %p2317_p13 = scmp.lt.s32.totalorder %s2315_s15, %s2310_s9 }
  0x26   : > { %p2313_p10 = pnand %p2312_p9, %p2311_p7 }
  0x27   : > { %p2318_p3 = por %p2317_p13, %p2316_p12 }
  0x28   : > { %p2314_p11 = pneg %p2313_p10 }
  0x2a   : > { %p2319_p5 = pnand %p2318_p3, %p2314_p11 }
  0x2c   : > { %2322 = shalt.err (!%p2319_p5)
}
  0x2d   : > { %s2420_s14 = smov 256   ;;  %s2421_s23 = smov 16  }
  0x2e   : > { %2095 = dma.hbm_to_vmem [thread:$0]  (!%p2551_p2), %s239_s28, 4096, %s241_s27, %s228_s6, %s2420_s14, %s2420_s14, %s2421_s23  }
  0x2f   : > { %252 = sbr.rel (%p2498_p8) target bundleno = 921 (0x399), region = 40 }
  0x34   : > { %s2568_s26 = sand.u32 1, %s2404_s19  }
  0x35   : > { %s2045_s11 = sshll.u32 %s2568_s26, 8  ;;  %s255_s7 = scalar_lea.sflag [#allocation3], %s2568_s26 }
  0x36   : > { %s2572_s9 = scalar_lea.vmem [#allocation2], %s2045_s11 }
  0x37   : > { %2383 = dma.done.wait (%p2485_p4), %s255_s7, 4096  }
  0x38   : > { %2385 = vsyncadd (%p2485_p4), %s255_s7, 4294963200 }
  0x39   : > { %2387 = dma.done.wait (%p44_p1), [#allocation6], 64  }
  0x3a   : > { %2389 = vsyncadd (%p44_p1), [#allocation6], 4294967232 }
  0x3b   : > { %2391 = dma.done.wait (%p44_p1), [#allocation9], 24672  }
  0x3c   : > { %2393 = vsyncadd (%p44_p1), [#allocation9], 4294942624  ;;  %v312_v0 = vld [vmem:[%s2572_s9 + $0x20] sm:$0xff]  ;;  %v313_v1 = vld [vmem:[%s2572_s9 + $0x28] sm:$0xff]  ;;  %v2422_v24 = vmov 256.0   ;;  %s2057_s24 = smul.u32 768, %s2568_s26 }
  0x3d   : > { %v308_v2 = vld [vmem:[%s2572_s9] sm:$0xff]  ;;  %v346_v3 = vadd.f32 %v313_v1, %v312_v0  ;;  %v309_v4 = vld [vmem:[%s2572_s9 + $0x8] sm:$0xff]  ;;  %v310_v9 = vld [vmem:[%s2572_s9 + $0x10] sm:$0xff]  ;;  %2153 = vrcp.f32 %v2422_v24  ;;  %s2058_s27 = smul.u32 768, %s2476_s22  ;;  %s1906_s15 = scalar_lea.sflag [#allocation4], %s2568_s26 }
  0x3e   : > { %v2591_v5 = vld [vmem:[%s2572_s9 + $0x40] sm:$0xff]  ;;  %v2594_v6 = vld [vmem:[%s2572_s9 + $0x48] sm:$0xff]  ;;  %v340_v7 = vadd.f32 %v309_v4, %v308_v2  ;;  %v314_v10 = vld [vmem:[%s2572_s9 + $0x30] sm:$0xff]  ;;  %s3103_s29 = scalar_lea.vmem [#allocation11], %s2057_s24  ;;  %s2358_s11 = scalar_lea.hbm %s3657_s5, 3072 }
  0x3f   : > { %v352_v8 = vadd.f32 %v2594_v6, %v2591_v5  ;;  %347 = vadd.xlane.f32.xlu1 %v346_v3  ;;  %v315_v11 = vld [vmem:[%s2572_s9 + $0x38] sm:$0xff]  ;;  %v318_v13 = vld [vmem:[%s2572_s9 + $0x50] sm:$0xff]  ;;  %v2605_v18 = vld [vmem:[%s2572_s9 + $0x60] sm:$0xff]  ;;  %s1918_s6 = scalar_lea.hbm %s3657_s5, %s2058_s27  ;;  %s1919_s10 = sshll.u32 %s3103_s29, 4  ;;  %s1920_s10 = int_to_ptr.vmem [resolvable:$true] %s1919_s10 }
  0x40   : > { %341 = vadd.xlane.f32.xlu0 %v340_v7  ;;  %v311_v12 = vld [vmem:[%s2572_s9 + $0x18] sm:$0xff]  ;;  %v349_v15 = vadd.f32 %v315_v11, %v314_v10  ;;  %v2608_v19 = vld [vmem:[%s2572_s9 + $0x68] sm:$0xff]  ;;  %v2611_v20 = vld [vmem:[%s2572_s9 + $0x70] sm:$0xff]  ;;  %s1921_s22 = sshll.u32 %s1918_s6, 4  ;;  %s1922_s22 = int_to_ptr.hbm [resolvable:$true] %s1921_s22 }
  0x41   : > { %353 = vadd.xlane.f32.xlu2 %v352_v8  ;;  %v319_v14 = vld [vmem:[%s2572_s9 + $0x58] sm:$0xff]  ;;  %v343_v16 = vadd.f32 %v311_v12, %v310_v9  ;;  %v358_v22 = vadd.f32 %v2608_v19, %v2605_v18  ;;  %v2641_v49 = vld [vmem:[%s2572_s9 + $0xa0] sm:$0xff]  ;;  %v2647_v53 = vld [vmem:[%s2572_s9 + $0xa8] sm:$0xff]  ;;  %s2352_s16 = sshra.s32 %s1922_s22, 4  ;;  %s2353_s16 = int_to_ptr.hbm [resolvable:$true] %s2352_s16 }
  0x42   : > { %v355_v17 = vadd.f32 %v319_v14, %v318_v13  ;;  %v2614_v21 = vld [vmem:[%s2572_s9 + $0x78] sm:$0xff]  ;;  %v2650_v54 = vld [vmem:[%s2572_s9 + $0x80] sm:$0xff]  ;;  %v2653_v55 = vld [vmem:[%s2572_s9 + $0x88] sm:$0xff]  ;;  %v370_v60 = vadd.f32 %v2647_v53, %v2641_v49  ;;  %s2354_s17 = scalar_lea.hbm %s2353_s16, 768  ;;  %p2359_p2 = scmp.lt.s32.totalorder %s2353_s16, %s3657_s5 }
  0x43   : > { %v361_v23 = vadd.f32 %v2614_v21, %v2611_v20  ;;  %v2154_v25 = vpop.eup %2153  ;;  %v364_v61 = vadd.f32 %v2653_v55, %v2650_v54  ;;  %v2705_v24 = vld [vmem:[%s2572_s9 + $0xb0] sm:$0xff]  ;;  %p2355_p1 = scmp.ne.s32.totalorder %s2353_s16, %s2354_s17  ;;  %p2360_p7 = scmp.lt.s32.totalorder %s2358_s11, %s2354_s17 }
  0x44   : > { %v389_v26 = vmul.f32 256.0, %v2154_v25  ;;  %vm393_vm0 = vweird.f32 %v2154_v25 }
  0x45   : > { %p2356_p4 = pnand %p2355_p1, %p2538_p0  ;;  %p2361_p9 = por %p2360_p7, %p2359_p2 }
  0x46   : > { %v390_v27 = vsub.f32 1.0, %v389_v26 }
  0x47   : > { %350 = vadd.xlane.f32.xlu1 %v349_v15  ;;  %p2357_p8 = pneg %p2356_p4 }
  0x48   : > { %344 = vadd.xlane.f32.xlu0 %v343_v16  ;;  %v391_v28 = vmul.f32 %v2154_v25, %v390_v27  ;;  %v913_v27 = vld [vmem:[#allocation8 + $0x2d0] sm:$0xff] }
  0x49   : > { %356 = vadd.xlane.f32.xlu2 %v355_v17  ;;  %1029 = vmatpush.msra.mxu0 %v913_v27  ;;  %v985_v27 = vld [vmem:[#allocation8 + $0x510] sm:$0xff]  ;;  %p2362_p10 = pnand %p2361_p9, %p2357_p8 }
  0x4a   : > { %v392_v29 = vadd.f32 %v2154_v25, %v391_v28  ;;  %v1009_v28 = vld [vmem:[#allocation8 + $0x5d0] sm:$0xff] }
  0x4b   : > { %1094 = vmatpush.msra.mxu1 %v1009_v28  ;;  %v890_v28 = vld [vmem:[#allocation8 + $0x218] sm:$0xff] }
  0x4c   : > { %v2620_v30 = vsel %vm393_vm0, %v2154_v25, %v392_v29  ;;  %v2708_v25 = vld [vmem:[%s2572_s9 + $0xb8] sm:$0xff] }
  0x4d   : > { %v914_v29 = vld [vmem:[#allocation8 + $0x2d8] sm:$0xff] }
  0x4e   : > { %1159 = vmatpush.msra.mxu2 %v914_v29  ;;  %v986_v29 = vld [vmem:[#allocation8 + $0x518] sm:$0xff] }
  0x50   : > { %359 = vadd.xlane.f32.xlu0 %v358_v22  ;;  %v2699_v22 = vld [vmem:[%s2572_s9 + $0xd0] sm:$0xff] }
  0x51   : > { %362 = vadd.xlane.f32.xlu2 %v361_v23  ;;  %v2702_v23 = vld [vmem:[%s2572_s9 + $0xd8] sm:$0xff] }
  0xb2   : > { %v348_v31 = vpop.xlane.xlu1 %347 }
  0xb3   : > { %v397_v32 = vmul.f32 %v2620_v30, %v348_v31  ;;  %v342_v33 = vpop.xlane.xlu0 %341  ;;  %v1010_v31 = vld [vmem:[#allocation8 + $0x5d8] sm:$0xff] }
  0xb4   : > { %v354_v34 = vpop.xlane.xlu2 %353  ;;  %v395_v35 = vmul.f32 %v2620_v30, %v342_v33  ;;  %v1003_v33 = vld [vmem:[#allocation8 + $0x5a0] sm:$0xff]  ;;  %1224 = vmatpush.msra.mxu3 %v1010_v31 }
  0xb5   : > { %v2624_v36 = vsub.f32 %v312_v0, %v397_v32  ;;  %v2626_v37 = vsub.f32 %v313_v1, %v397_v32  ;;  %v399_v7 = vmul.f32 %v2620_v30, %v354_v34  ;;  %v907_v32 = vld [vmem:[#allocation8 + $0x2a0] sm:$0xff]  ;;  %v908_v34 = vld [vmem:[#allocation8 + $0x2a8] sm:$0xff]  ;;  %1095 = vmatpush.msra.mxu1 %v1003_v33 }
  0xb6   : > { %v2628_v38 = vsub.f32 %v308_v2, %v395_v35  ;;  %v2630_v39 = vsub.f32 %v309_v4, %v395_v35  ;;  %v1004_v35 = vld [vmem:[#allocation8 + $0x5a8] sm:$0xff]  ;;  %1030 = vmatpush.msra.mxu0 %v907_v32  ;;  %1160 = vmatpush.msra.mxu2 %v908_v34  ;;  %v883_v31 = vld [vmem:[#allocation8 + $0x1e0] sm:$0xff] }
  0xb7   : > { %v447_v40 = vmul.f32 %v2624_v36, %v2624_v36  ;;  %v448_v41 = vmul.f32 %v2626_v37, %v2626_v37  ;;  %1225 = vmatpush.msra.mxu3 %v1004_v35  ;;  %v979_v32 = vld [vmem:[#allocation8 + $0x4e0] sm:$0xff]  ;;  %v884_v33 = vld [vmem:[#allocation8 + $0x1e8] sm:$0xff]  ;;  %v877_v35 = vld [vmem:[#allocation8 + $0x1b0] sm:$0xff] }
  0xb8   : > { %v443_v42 = vmul.f32 %v2628_v38, %v2628_v38  ;;  %v444_v43 = vmul.f32 %v2630_v39, %v2630_v39  ;;  %v980_v34 = vld [vmem:[#allocation8 + $0x4e8] sm:$0xff] }
  0xb9   : > { %v481_v44 = vadd.f32 %v448_v41, %v447_v40  ;;  %v379_v40 = vadd.f32 %v2702_v23, %v2699_v22  ;;  %v373_v41 = vadd.f32 %v2708_v25, %v2705_v24 }
  0xba   : > { %v475_v45 = vadd.f32 %v444_v43, %v443_v42  ;;  %v351_v46 = vpop.xlane.xlu1 %350 }
  0xbb   : > { %v345_v47 = vpop.xlane.xlu0 %344  ;;  %482 = vadd.xlane.f32.xlu2 %v481_v44  ;;  %v398_v52 = vmul.f32 %v2620_v30, %v351_v46 }
  0xbc   : > { %v357_v48 = vpop.xlane.xlu2 %356  ;;  %v396_v50 = vmul.f32 %v2620_v30, %v345_v47  ;;  %476 = vadd.xlane.f32.xlu1 %v475_v45 }
  0xbd   : > { %v400_v51 = vmul.f32 %v2620_v30, %v357_v48  ;;  %v2667_v62 = vsub.f32 %v314_v10, %v398_v52  ;;  %v2669_v63 = vsub.f32 %v315_v11, %v398_v52  ;;  %v2685_v10 = vld [vmem:[%s2572_s9 + $0x90] sm:$0xff]  ;;  %v2688_v11 = vld [vmem:[%s2572_s9 + $0x98] sm:$0xff]  ;;  %v2731_v48 = vld [vmem:[%s2572_s9 + $0xc0] sm:$0xff] }
  0xbe   : > { %v2655_v56 = vsub.f32 %v310_v9, %v396_v50  ;;  %v2657_v57 = vsub.f32 %v311_v12, %v396_v50  ;;  %v367_v16 = vadd.f32 %v2688_v11, %v2685_v10 }
  0xbf   : > { %v2659_v58 = vsub.f32 %v318_v13, %v400_v51  ;;  %v2661_v59 = vsub.f32 %v319_v14, %v400_v51  ;;  %v449_v8 = vmul.f32 %v2667_v62, %v2667_v62  ;;  %v450_v9 = vmul.f32 %v2669_v63, %v2669_v63 }
  0xc0   : > { %v445_v0 = vmul.f32 %v2655_v56, %v2655_v56  ;;  %v446_v1 = vmul.f32 %v2657_v57, %v2657_v57  ;;  %v2691_v13 = vsub.f32 %v2591_v5, %v399_v7  ;;  %v2694_v14 = vsub.f32 %v2594_v6, %v399_v7 }
  0xc1   : > { %v453_v3 = vmul.f32 %v2659_v58, %v2659_v58  ;;  %v454_v4 = vmul.f32 %v2661_v59, %v2661_v59  ;;  %v484_v15 = vadd.f32 %v450_v9, %v449_v8  ;;  %v901_v8 = vld [vmem:[#allocation8 + $0x270] sm:$0xff] }
  0xc2   : > { %v478_v2 = vadd.f32 %v446_v1, %v445_v0  ;;  %v451_v6 = vmul.f32 %v2691_v13, %v2691_v13  ;;  %v452_v26 = vmul.f32 %v2694_v14, %v2694_v14  ;;  %v2749_v1 = vld [vmem:[%s2572_s9 + $0xe0] sm:$0xff]  ;;  %v997_v9 = vld [vmem:[#allocation8 + $0x570] sm:$0xff]  ;;  %1031 = vmatpush.msra.mxu0 %v901_v8  ;;  %v956_v8 = vld [vmem:[#allocation8 + $0x428] sm:$0xff] }
  0xc3   : > { %371 = vadd.xlane.f32.xlu2 %v370_v60  ;;  %v490_v12 = vadd.f32 %v454_v4, %v453_v3  ;;  %v360_v17 = vpop.xlane.xlu0 %359  ;;  %v2757_v3 = vld [vmem:[%s2572_s9 + $0xf0] sm:$0xff]  ;;  %v2760_v4 = vld [vmem:[%s2572_s9 + $0xf8] sm:$0xff]  ;;  %1096 = vmatpush.msra.mxu1 %v997_v9 }
  0xc4   : > { %365 = vadd.xlane.f32.xlu1 %v364_v61  ;;  %479 = vadd.xlane.f32.xlu0 %v478_v2  ;;  %v401_v5 = vmul.f32 %v2620_v30, %v360_v17  ;;  %v487_v44 = vadd.f32 %v452_v26, %v451_v6  ;;  %v363_v45 = vpop.xlane.xlu2 %362  ;;  %v2752_v2 = vld [vmem:[%s2572_s9 + $0xe8] sm:$0xff]  ;;  %v385_v7 = vadd.f32 %v2760_v4, %v2757_v3  ;;  %v889_v26 = vld [vmem:[#allocation8 + $0x210] sm:$0xff] }
  0xc5   : > { %v402_v46 = vmul.f32 %v2620_v30, %v363_v45  ;;  %v991_v17 = vld [vmem:[#allocation8 + $0x540] sm:$0xff]  ;;  %v992_v6 = vld [vmem:[#allocation8 + $0x548] sm:$0xff]  ;;  %v853_v9 = vld [vmem:[#allocation8 + $0xf0] sm:$0xff] }
  0xc6   : > { %v2720_v42 = vsub.f32 %v2605_v18, %v401_v5  ;;  %v2723_v43 = vsub.f32 %v2608_v19, %v401_v5  ;;  %v2734_v19 = vld [vmem:[%s2572_s9 + $0xc8] sm:$0xff]  ;;  %1097 = vmatpush.msra.mxu1 %v991_v17 }
  0xc7   : > { %v2737_v50 = vsub.f32 %v2611_v20, %v402_v46  ;;  %v2740_v51 = vsub.f32 %v2614_v21, %v402_v46  ;;  %v376_v52 = vadd.f32 %v2734_v19, %v2731_v48  ;;  %v382_v21 = vadd.f32 %v2752_v2, %v2749_v1  ;;  %v896_v5 = vld [vmem:[#allocation8 + $0x248] sm:$0xff]  ;;  %v871_v45 = vld [vmem:[#allocation8 + $0x180] sm:$0xff] }
  0xc8   : > { %v455_v47 = vmul.f32 %v2720_v42, %v2720_v42  ;;  %v456_v18 = vmul.f32 %v2723_v43, %v2723_v43  ;;  %1098 = vmatpush.msra.mxu1 %v985_v27  ;;  %v967_v46 = vld [vmem:[#allocation8 + $0x480] sm:$0xff]  ;;  %v841_v27 = vld [vmem:[#allocation8 + $0x90] sm:$0xff] }
  0xc9   : > { %v457_v61 = vmul.f32 %v2737_v50, %v2737_v50  ;;  %v458_v0 = vmul.f32 %v2740_v51, %v2740_v51  ;;  %v847_v17 = vld [vmem:[#allocation8 + $0xc0] sm:$0xff] }
  0xca   : > { %v493_v60 = vadd.f32 %v456_v18, %v455_v47  ;;  %1099 = vmatpush.msra.mxu1 %v979_v32  ;;  %v872_v47 = vld [vmem:[#allocation8 + $0x188] sm:$0xff]  ;;  %v835_v32 = vld [vmem:[#allocation8 + $0x60] sm:$0xff] }
  0xcb   : > { %491 = vadd.xlane.f32.xlu2 %v490_v12  ;;  %v496_v20 = vadd.f32 %v458_v0, %v457_v61  ;;  %v902_v12 = vld [vmem:[#allocation8 + $0x278] sm:$0xff]  ;;  %v968_v18 = vld [vmem:[#allocation8 + $0x488] sm:$0xff] }
  0xcc   : > { %485 = vadd.xlane.f32.xlu1 %v484_v15  ;;  %368 = vadd.xlane.f32.xlu0 %v367_v16  ;;  %v998_v15 = vld [vmem:[#allocation8 + $0x578] sm:$0xff]  ;;  %v895_v16 = vld [vmem:[#allocation8 + $0x240] sm:$0xff] }
  0xcd   : > { %1161 = vmatpush.msra.mxu2 %v902_v12  ;;  %1226 = vmatpush.msra.mxu3 %v998_v15  ;;  %v866_v61 = vld [vmem:[#allocation8 + $0x158] sm:$0xff]  ;;  %v949_v12 = vld [vmem:[#allocation8 + $0x3f0] sm:$0xff] }
  0xce   : > { %1032 = vmatpush.msra.mxu0 %v895_v16  ;;  %v962_v0 = vld [vmem:[#allocation8 + $0x458] sm:$0xff] }
  0xcf   : > { %1162 = vmatpush.msra.mxu2 %v896_v5  ;;  %1227 = vmatpush.msra.mxu3 %v992_v6  ;;  %v854_v15 = vld [vmem:[#allocation8 + $0xf8] sm:$0xff]  ;;  %v943_v5 = vld [vmem:[#allocation8 + $0x3c0] sm:$0xff]  ;;  %v848_v6 = vld [vmem:[#allocation8 + $0xc8] sm:$0xff] }
  0xd0   : > { %1033 = vmatpush.msra.mxu0 %v889_v26  ;;  %v950_v16 = vld [vmem:[#allocation8 + $0x3f8] sm:$0xff]  ;;  %v944_v26 = vld [vmem:[#allocation8 + $0x3c8] sm:$0xff] }
  0xd1   : > { %1163 = vmatpush.msra.mxu2 %v890_v28  ;;  %1228 = vmatpush.msra.mxu3 %v986_v29  ;;  %v937_v28 = vld [vmem:[#allocation8 + $0x390] sm:$0xff]  ;;  %v842_v29 = vld [vmem:[#allocation8 + $0x98] sm:$0xff] }
  0xd2   : > { %1034 = vmatpush.msra.mxu0 %v883_v31  ;;  %v938_v31 = vld [vmem:[#allocation8 + $0x398] sm:$0xff] }
  0xd3   : > { %380 = vadd.xlane.f32.xlu2 %v379_v40  ;;  %1164 = vmatpush.msra.mxu2 %v884_v33  ;;  %v973_v40 = vld [vmem:[#allocation8 + $0x4b0] sm:$0xff]  ;;  %v931_v33 = vld [vmem:[#allocation8 + $0x360] sm:$0xff] }
  0xd4   : > { %374 = vadd.xlane.f32.xlu1 %v373_v41  ;;  %488 = vadd.xlane.f32.xlu0 %v487_v44  ;;  %v878_v41 = vld [vmem:[#allocation8 + $0x1b8] sm:$0xff] }
  0xd5   : > { %1229 = vmatpush.msra.mxu3 %v980_v34  ;;  %1035 = vmatpush.msra.mxu0 %v877_v35  ;;  %v974_v44 = vld [vmem:[#allocation8 + $0x4b8] sm:$0xff]  ;;  %v836_v34 = vld [vmem:[#allocation8 + $0x68] sm:$0xff] }
  0xd6   : > { %1100 = vmatpush.msra.mxu1 %v973_v40  ;;  %1165 = vmatpush.msra.mxu2 %v878_v41  ;;  %v932_v35 = vld [vmem:[#allocation8 + $0x368] sm:$0xff] }
  0xd7   : > { %1230 = vmatpush.msra.mxu3 %v974_v44  ;;  %1036 = vmatpush.msra.mxu0 %v871_v45  ;;  %v829_v45 = vld [vmem:[#allocation8 + $0x30] sm:$0xff] }
  0xd8   : > { %1101 = vmatpush.msra.mxu1 %v967_v46  ;;  %1166 = vmatpush.msra.mxu2 %v872_v47  ;;  %v925_v46 = vld [vmem:[#allocation8 + $0x330] sm:$0xff]  ;;  %v830_v47 = vld [vmem:[#allocation8 + $0x38] sm:$0xff] }
  0xd9   : > { %1231 = vmatpush.msra.mxu3 %v968_v18 }
  0xda   : > { %1167 = vmatpush.msra.mxu2 %v866_v61  ;;  %v823_v61 = vld [vmem:[#allocation8] sm:$0xff] }
  0xdb   : > { %1232 = vmatpush.msra.mxu3 %v962_v0  ;;  %v919_v0 = vld [vmem:[#allocation8 + $0x300] sm:$0xff] }
  0xdc   : > { %377 = vadd.xlane.f32.xlu0 %v376_v52  ;;  %494 = vadd.xlane.f32.xlu1 %v493_v60  ;;  %v865_v52 = vld [vmem:[#allocation8 + $0x150] sm:$0xff] }
  0xdd   : > { %v961_v60 = vld [vmem:[#allocation8 + $0x450] sm:$0xff]  ;;  %1037 = vmatpush.msra.mxu0 %v865_v52  ;;  %1233 = vmatpush.msra.mxu3 %v956_v8  ;;  %v926_v52 = vld [vmem:[#allocation8 + $0x338] sm:$0xff] }
  0xde   : > { %1102 = vmatpush.msra.mxu1 %v961_v60 }
  0xdf   : > { %1234 = vmatpush.msra.mxu3 %v950_v16 }
  0xe1   : > { %1235 = vmatpush.msra.mxu3 %v944_v26 }
  0xe3   : > { %1236 = vmatpush.msra.mxu3 %v938_v31 }
  0xe4   : > { %497 = vadd.xlane.f32.xlu0 %v496_v20  ;;  %383 = vadd.xlane.f32.xlu1 %v382_v21  ;;  %v859_v20 = vld [vmem:[#allocation8 + $0x120] sm:$0xff] }
  0xe5   : > { %v955_v21 = vld [vmem:[#allocation8 + $0x420] sm:$0xff]  ;;  %1038 = vmatpush.msra.mxu0 %v859_v20  ;;  %1237 = vmatpush.msra.mxu3 %v932_v35  ;;  %v824_v20 = vld [vmem:[#allocation8 + $0x8] sm:$0xff] }
  0xe6   : > { %1103 = vmatpush.msra.mxu1 %v955_v21 }
  0xe7   : > { %1039 = vmatpush.msra.mxu0 %v853_v9  ;;  %1238 = vmatpush.msra.mxu3 %v926_v52 }
  0xe8   : > { %1104 = vmatpush.msra.mxu1 %v949_v12 }
  0xe9   : > { %1040 = vmatpush.msra.mxu0 %v847_v17 }
  0xea   : > { %1105 = vmatpush.msra.mxu1 %v943_v5 }
  0xeb   : > { %1041 = vmatpush.msra.mxu0 %v841_v27 }
  0xec   : > { %386 = vadd.xlane.f32.xlu0 %v385_v7  ;;  %v860_v7 = vld [vmem:[#allocation8 + $0x128] sm:$0xff]  ;;  %1106 = vmatpush.msra.mxu1 %v937_v28 }
  0xed   : > { %1168 = vmatpush.msra.mxu2 %v860_v7  ;;  %1042 = vmatpush.msra.mxu0 %v835_v32  ;;  %v920_v7 = vld [vmem:[#allocation8 + $0x308] sm:$0xff] }
  0xee   : > { %1107 = vmatpush.msra.mxu1 %v931_v33  ;;  %1239 = vmatpush.msra.mxu3 %v920_v7 }
  0xef   : > { %1169 = vmatpush.msra.mxu2 %v854_v15  ;;  %1043 = vmatpush.msra.mxu0 %v829_v45 }
  0xf0   : > { %1108 = vmatpush.msra.mxu1 %v925_v46 }
  0xf1   : > { %1170 = vmatpush.msra.mxu2 %v848_v6  ;;  %1044 = vmatpush.msra.mxu0 %v823_v61 }
  0xf2   : > { %1109 = vmatpush.msra.mxu1 %v919_v0 }
  0xf3   : > { %1171 = vmatpush.msra.mxu2 %v842_v29 }
  0xf5   : > { %1172 = vmatpush.msra.mxu2 %v836_v34 }
  0xf7   : > { %1173 = vmatpush.msra.mxu2 %v830_v47 }
  0xf9   : > { %1174 = vmatpush.msra.mxu2 %v824_v20 }
 0x12e   : > { %v483_v40 = vpop.xlane.xlu2 %482 }
 0x12f   : > { %v525_v41 = vmul.f32 %v483_v40, %v2620_v30  ;;  %v477_v44 = vpop.xlane.xlu1 %476 }
 0x130   : > { %v523_v18 = vmul.f32 %v477_v44, %v2620_v30  ;;  %v785_v44 = vld [vmem:[#allocation7] sm:$0x3] }
 0x131   : > { %v2766_v60 = vadd.f32 1e-05, %v525_v41 }
 0x132   : > { %v539_v21 = vadd.f32 1e-05, %v523_v18 }
 0x133   : > { %2155 = vrsqrt.f32 %v2766_v60  ;;  %vm581_vm4 = vweird.f32 %v2766_v60 }
 0x134   : > { %2157 = vrsqrt.f32 %v539_v21  ;;  %vm561_vm2 = vweird.f32 %v539_v21 }
 0x136   : > { %v372_v8 = vpop.xlane.xlu2 %371 }
 0x137   : > { %v405_v9 = vmul.f32 %v2620_v30, %v372_v8  ;;  %v366_v12 = vpop.xlane.xlu1 %365  ;;  %v480_v15 = vpop.xlane.xlu0 %479 }
 0x138   : > { %v403_v16 = vmul.f32 %v2620_v30, %v366_v12  ;;  %v524_v17 = vmul.f32 %v480_v15, %v2620_v30  ;;  %v2807_v12 = vperm.slane %v785_v44, 0 }
 0x139   : > { %v2772_v5 = vpop.eup %2155  ;;  %v2783_v31 = vsub.f32 %v2641_v49, %v405_v9  ;;  %v2789_v34 = vsub.f32 %v2647_v53, %v405_v9  ;;  %v747_v49 = vld [vmem:[#allocation5] sm:$0x3] }
 0x13a   : > { %v2158_v6 = vpop.eup %2157  ;;  %v576_v26 = vmul.f32 %v2772_v5, %v2766_v60  ;;  %v2777_v27 = vsub.f32 %v2650_v54, %v403_v16  ;;  %v2780_v28 = vsub.f32 %v2653_v55, %v403_v16  ;;  %v2785_v32 = vadd.f32 1e-05, %v524_v17 }
 0x13b   : > { %v556_v29 = vmul.f32 %v2158_v6, %v539_v21  ;;  %v463_v61 = vmul.f32 %v2783_v31, %v2783_v31  ;;  %v464_v0 = vmul.f32 %v2789_v34, %v2789_v34  ;;  %vm562_vm1 = vweird.f32 %v2158_v6 }
 0x13c   : > { %v577_v33 = vmul.f32 %v2772_v5, %v576_v26  ;;  %v459_v35 = vmul.f32 %v2777_v27, %v2777_v27  ;;  %v460_v54 = vmul.f32 %v2780_v28, %v2780_v28  ;;  %2159 = vrsqrt.f32 %v2785_v32  ;;  %vm563_vm3 = vmor %vm561_vm2, %vm562_vm1 }
 0x13d   : > { %v557_v40 = vmul.f32 %v2158_v6, %v556_v29  ;;  %v2803_v8 = vperm.slane %v747_v49, 0  ;;  %v2805_v9 = vperm.slane %v747_v49, 1  ;;  %vm582_vm5 = vweird.f32 %v2772_v5 }
 0x13e   : > { %v492_v55 = vpop.xlane.xlu2 %491  ;;  %v499_v41 = vadd.f32 %v460_v54, %v459_v35  ;;  %v578_v45 = vmul.f32 0.5, %v577_v33  ;;  %v2813_v33 = vperm.slane %v785_v44, 1  ;;  %v505_v54 = vadd.f32 %v464_v0, %v463_v61  ;;  %vm583_vm6 = vmor %vm581_vm4, %vm582_vm5 }
 0x13f   : > { %v558_v46 = vmul.f32 0.5, %v557_v40  ;;  %v528_v47 = vmul.f32 %v492_v55, %v2620_v30  ;;  %v486_v18 = vpop.xlane.xlu1 %485  ;;  %v369_v53 = vpop.xlane.xlu0 %368  ;;  %vm571_vm8 = vweird.f32 %v2785_v32 }
 0x140   : > { %v526_v52 = vmul.f32 %v486_v18, %v2620_v30  ;;  %500 = vadd.xlane.f32.xlu2 %v499_v41  ;;  %v404_v7 = vmul.f32 %v2620_v30, %v369_v53  ;;  %v579_v17 = vsub.f32 1.5, %v578_v45 }
 0x141   : > { %v559_v20 = vsub.f32 1.5, %v558_v46  ;;  %v2811_v29 = vadd.f32 1e-05, %v528_v47 }
 0x142   : > { %v2809_v15 = vadd.f32 1e-05, %v526_v52  ;;  %v2160_v16 = vpop.eup %2159  ;;  %v2819_v55 = vsub.f32 %v2685_v10, %v404_v7  ;;  %v2822_v41 = vsub.f32 %v2688_v11, %v404_v7  ;;  %v580_v46 = vmul.f32 %v2772_v5, %v579_v17 }
 0x143   : > { %v560_v26 = vmul.f32 %v2158_v6, %v559_v20  ;;  %v566_v35 = vmul.f32 %v2160_v16, %v2785_v32  ;;  %vm572_vm7 = vweird.f32 %v2160_v16  ;;  %vm611_vm0 = vweird.f32 %v2811_v29 }
 0x144   : > { %2161 = vrsqrt.f32 %v2809_v15  ;;  %v462_v61 = vmul.f32 %v2822_v41, %v2822_v41  ;;  %vm573_vm9 = vmor %vm571_vm8, %vm572_vm7  ;;  %vm591_vm10 = vweird.f32 %v2809_v15 }
 0x145   : > { %v564_v40 = vsel %vm563_vm3, %v2158_v6, %v560_v26  ;;  %v567_v44 = vmul.f32 %v2160_v16, %v566_v35  ;;  %2163 = vrsqrt.f32 %v2811_v29  ;;  %v584_v26 = vsel %vm583_vm6, %v2772_v5, %v580_v46 }
 0x146   : > { %v715_v21 = vmul.f32 %v564_v40, %v2628_v38  ;;  %v716_v49 = vmul.f32 %v564_v40, %v2630_v39  ;;  %v381_v45 = vpop.xlane.xlu2 %380  ;;  %v461_v39 = vmul.f32 %v2819_v55, %v2819_v55  ;;  %v719_v46 = vmul.f32 %v584_v26, %v2624_v36 }
 0x147   : > { %v408_v6 = vmul.f32 %v2620_v30, %v381_v45  ;;  %v375_v47 = vpop.xlane.xlu1 %374  ;;  %v489_v10 = vpop.xlane.xlu0 %488  ;;  %v568_v53 = vmul.f32 0.5, %v567_v44 }
 0x148   : > { %v753_v18 = vmul.f32 %v2803_v8, %v715_v21  ;;  %v754_v11 = vmul.f32 %v2805_v9, %v716_v49  ;;  %v406_v52 = vmul.f32 %v2620_v30, %v375_v47  ;;  %506 = vadd.xlane.f32.xlu2 %v505_v54  ;;  %v527_v40 = vmul.f32 %v489_v10, %v2620_v30 }
 0x149   : > { %v2838_v38 = vsub.f32 %v2699_v22, %v408_v6  ;;  %v569_v60 = vsub.f32 1.5, %v568_v53  ;;  %v2853_v17 = vsub.f32 %v2702_v23, %v408_v6  ;;  %v502_v49 = vadd.f32 %v462_v61, %v461_v39 }
 0x14a   : > { %v2844_v0 = vpop.eup %2161  ;;  %v2847_v20 = vadd.f32 %v2807_v12, %v753_v18  ;;  %v2850_v7 = vadd.f32 %v2813_v33, %v754_v11  ;;  %v2860_v54 = vsub.f32 %v2705_v24, %v406_v52  ;;  %v2869_v32 = vsub.f32 %v2708_v25, %v406_v52 }
 0x14b   : > { %v586_v22 = vmul.f32 %v2844_v0, %v2809_v15  ;;  %v570_v35 = vmul.f32 %v2160_v16, %v569_v60  ;;  %v2864_v21 = vpop.eup %2163  ;;  %v2873_v5 = vadd.f32 1e-05, %v527_v40  ;;  %v469_v44 = vmul.f32 %v2838_v38, %v2838_v38  ;;  %503 = vadd.xlane.f32.xlu1 %v502_v49 }
 0x14c   : > { %1045 = vmatmul.f32.vlgmr.msra.gmra.mxu0 %v2847_v20  ;;  %1110 = vmatmul.f32.vlgmr.msra.gmra.mxu1 %v2850_v7  ;;  %v470_v45 = vmul.f32 %v2853_v17, %v2853_v17  ;;  %v720_v18 = vmul.f32 %v584_v26, %v2626_v37  ;;  %v465_v53 = vmul.f32 %v2860_v54, %v2860_v54  ;;  %vm592_vm11 = vweird.f32 %v2844_v0 }
 0x14d   : > { %v587_v23 = vmul.f32 %v2844_v0, %v586_v22  ;;  %1175 = vmatmul.f32.vlgmr.msra.gmra.mxu2 %v2847_v20  ;;  %v574_v24 = vsel %vm573_vm9, %v2160_v16, %v570_v35  ;;  %1240 = vmatmul.f32.vlgmr.msra.gmra.mxu3 %v2850_v7  ;;  %2165 = vrsqrt.f32 %v2873_v5  ;;  %v606_v39 = vmul.f32 %v2864_v21, %v2811_v29  ;;  %vm593_vm12 = vmor %vm591_vm10, %vm592_vm11 }
 0x14e   : > { %v717_v25 = vmul.f32 %v574_v24, %v2655_v56  ;;  %v718_v6 = vmul.f32 %v574_v24, %v2657_v57  ;;  %v514_v37 = vadd.f32 %v470_v45, %v469_v44  ;;  %v466_v60 = vmul.f32 %v2869_v32, %v2869_v32 }
 0x14f   : > { %v588_v47 = vmul.f32 0.5, %v587_v23  ;;  %v495_v10 = vpop.xlane.xlu1 %494  ;;  %v378_v16 = vpop.xlane.xlu0 %377  ;;  %v757_v23 = vmul.f32 %v2803_v8, %v719_v46  ;;  %v758_v45 = vmul.f32 %v2805_v9, %v720_v18  ;;  %vm601_vm13 = vweird.f32 %v2873_v5 }
 0x150   : > { %v529_v11 = vmul.f32 %v495_v10, %v2620_v30  ;;  %v755_v52 = vmul.f32 %v2803_v8, %v717_v25  ;;  %v756_v36 = vmul.f32 %v2805_v9, %v718_v6  ;;  %v407_v57 = vmul.f32 %v2620_v30, %v378_v16  ;;  %515 = vadd.xlane.f32.xlu2 %v514_v37 }
 0x151   : > { %v589_v56 = vsub.f32 1.5, %v588_v47  ;;  %v508_v24 = vadd.f32 %v466_v60, %v465_v53  ;;  %v607_v25 = vmul.f32 %v2864_v21, %v606_v39  ;;  %v2929_v18 = vadd.f32 %v2807_v12, %v757_v23 }
 0x152   : > { %v2893_v61 = vadd.f32 1e-05, %v529_v11  ;;  %v2898_v22 = vadd.f32 %v2807_v12, %v755_v52  ;;  %v2901_v26 = vadd.f32 %v2813_v33, %v756_v36  ;;  %v2908_v40 = vsub.f32 %v2731_v48, %v407_v57 }
 0x153   : > { %v590_v35 = vmul.f32 %v2844_v0, %v589_v56  ;;  %v2912_v49 = vsub.f32 %v2734_v19, %v407_v57  ;;  %v2166_v44 = vpop.eup %2165  ;;  %509 = vadd.xlane.f32.xlu0 %v508_v24  ;;  %v2936_v52 = vadd.f32 %v2813_v33, %v758_v45  ;;  %vm612_vm1 = vweird.f32 %v2864_v21 }
 0x154   : > { %2167 = vrsqrt.f32 %v2893_v61  ;;  %1048 = vmatmul.f32.gmra.mxu0 %v2898_v22  ;;  %1113 = vmatmul.f32.gmra.mxu1 %v2901_v26  ;;  %v596_v48 = vmul.f32 %v2166_v44, %v2873_v5  ;;  %v467_v16 = vmul.f32 %v2908_v40, %v2908_v40  ;;  %vm602_vm14 = vweird.f32 %v2166_v44  ;;  %vm613_vm2 = vmor %vm611_vm0, %vm612_vm1 }
 0x155   : > { %1178 = vmatmul.f32.gmra.mxu2 %v2898_v22  ;;  %1243 = vmatmul.f32.gmra.mxu3 %v2901_v26  ;;  %v594_v6 = vsel %vm593_vm12, %v2844_v0, %v590_v35  ;;  %v468_v11 = vmul.f32 %v2912_v49, %v2912_v49  ;;  %v608_v0 = vmul.f32 0.5, %v607_v25  ;;  %vm603_vm15 = vmor %vm601_vm13, %vm602_vm14  ;;  %vm621_vm3 = vweird.f32 %v2893_v61 }
 0x156   : > { %v597_v15 = vmul.f32 %v2166_v44, %v596_v48  ;;  %v721_v57 = vmul.f32 %v594_v6, %v2667_v62  ;;  %v722_v39 = vmul.f32 %v594_v6, %v2669_v63 }
 0x157   : > { %v384_v19 = vpop.xlane.xlu1 %383  ;;  %v498_v46 = vpop.xlane.xlu0 %497  ;;  %v511_v23 = vadd.f32 %v468_v11, %v467_v16  ;;  %v609_v63 = vsub.f32 1.5, %v608_v0 }
 0x158   : > { %v409_v47 = vmul.f32 %v2620_v30, %v384_v19  ;;  %v530_v10 = vmul.f32 %v498_v46, %v2620_v30  ;;  %v598_v37 = vmul.f32 0.5, %v597_v15  ;;  %v760_v5 = vmul.f32 %v2805_v9, %v722_v39 }
 0x159   : > { %512 = vadd.xlane.f32.xlu1 %v511_v23  ;;  %v610_v15 = vmul.f32 %v2864_v21, %v609_v63  ;;  %v915_v23 = vld [vmem:[#allocation8 + $0x2e0] sm:$0xff] }
 0x15a   : > { %v2933_v53 = vpop.eup %2167  ;;  %v2939_v36 = vsub.f32 %v2749_v1, %v409_v47  ;;  %v2942_v56 = vsub.f32 %v2752_v2, %v409_v47  ;;  %v2946_v60 = vadd.f32 1e-05, %v530_v10  ;;  %v599_v45 = vsub.f32 1.5, %v598_v37  ;;  %v916_v37 = vld [vmem:[#allocation8 + $0x2e8] sm:$0xff]  ;;  %v1011_v63 = vld [vmem:[#allocation8 + $0x5e0] sm:$0xff]  ;;  %1289 = vmatpush.msrb.mxu0 %v915_v23 }
 0x15b   : > { %v616_v35 = vmul.f32 %v2933_v53, %v2893_v61  ;;  %v759_v2 = vmul.f32 %v2803_v8, %v721_v57  ;;  %1419 = vmatpush.msrb.mxu2 %v916_v37  ;;  %vm622_vm4 = vweird.f32 %v2933_v53  ;;  %1354 = vmatpush.msrb.mxu1 %v1011_v63  ;;  %v892_v37 = vld [vmem:[#allocation8 + $0x228] sm:$0xff] }
 0x15c   : > { %v471_v24 = vmul.f32 %v2939_v36, %v2939_v36  ;;  %v472_v1 = vmul.f32 %v2942_v56, %v2942_v56  ;;  %2169 = vrsqrt.f32 %v2946_v60  ;;  %1051 = vmatmul.f32.gmra.mxu0 %v2929_v18  ;;  %1116 = vmatmul.f32.gmra.mxu1 %v2936_v52  ;;  %v600_v25 = vmul.f32 %v2166_v44, %v599_v45  ;;  %vm623_vm5 = vmor %vm621_vm3, %vm622_vm4 }
 0x15d   : > { %1181 = vmatmul.f32.gmra.mxu2 %v2929_v18  ;;  %1246 = vmatmul.f32.gmra.mxu3 %v2936_v52  ;;  %v617_v19 = vmul.f32 %v2933_v53, %v616_v35  ;;  %v2976_v11 = vadd.f32 %v2807_v12, %v759_v2  ;;  %v1012_v35 = vld [vmem:[#allocation8 + $0x5e8] sm:$0xff]  ;;  %v910_v2 = vld [vmem:[#allocation8 + $0x2b8] sm:$0xff]  ;;  %vm631_vm6 = vweird.f32 %v2946_v60 }
 0x15e   : > { %v517_v62 = vadd.f32 %v472_v1, %v471_v24  ;;  %v604_v6 = vsel %vm603_vm15, %v2166_v44, %v600_v25  ;;  %v2980_v44 = vadd.f32 %v2813_v33, %v760_v5  ;;  %v614_v24 = vsel %vm613_vm2, %v2864_v21, %v610_v15  ;;  %1484 = vmatpush.msrb.mxu3 %v1012_v35  ;;  %v1006_v25 = vld [vmem:[#allocation8 + $0x5b8] sm:$0xff]  ;;  %v1005_v5 = vld [vmem:[#allocation8 + $0x5b0] sm:$0xff]  ;;  %v1000_v21 = vld [vmem:[#allocation8 + $0x588] sm:$0xff] }
 0x15f   : > { %v387_v48 = vpop.xlane.xlu0 %386  ;;  %v723_v0 = vmul.f32 %v604_v6, %v2691_v13  ;;  %v724_v29 = vmul.f32 %v604_v6, %v2694_v14  ;;  %v618_v57 = vmul.f32 0.5, %v617_v19  ;;  %v904_v19 = vld [vmem:[#allocation8 + $0x288] sm:$0xff]  ;;  %1420 = vmatpush.msrb.mxu2 %v910_v2  ;;  %v903_v15 = vld [vmem:[#allocation8 + $0x280] sm:$0xff]  ;;  %1355 = vmatpush.msrb.mxu1 %v1005_v5 }
 0x160   : > { %v410_v46 = vmul.f32 %v2620_v30, %v387_v48  ;;  %518 = vadd.xlane.f32.xlu0 %v517_v62  ;;  %v909_v48 = vld [vmem:[#allocation8 + $0x2b0] sm:$0xff]  ;;  %1485 = vmatpush.msrb.mxu3 %v1006_v25 }
 0x161   : > { %v761_v13 = vmul.f32 %v2803_v8, %v723_v0  ;;  %v762_v1 = vmul.f32 %v2805_v9, %v724_v29  ;;  %v619_v45 = vsub.f32 1.5, %v618_v57  ;;  %1290 = vmatpush.msrb.mxu0 %v909_v48  ;;  %v726_v0 = vmul.f32 %v614_v24, %v2661_v59  ;;  %1421 = vmatpush.msrb.mxu2 %v904_v19  ;;  %v994_v59 = vld [vmem:[#allocation8 + $0x558] sm:$0xff] }
 0x162   : > { %v2967_v47 = vsub.f32 %v2757_v3, %v410_v46  ;;  %v2970_v10 = vsub.f32 %v2760_v4, %v410_v46  ;;  %v2972_v16 = vpop.eup %2169  ;;  %v725_v46 = vmul.f32 %v614_v24, %v2659_v58  ;;  %1486 = vmatpush.msrb.mxu3 %v1000_v21  ;;  %v999_v58 = vld [vmem:[#allocation8 + $0x580] sm:$0xff]  ;;  %v988_v24 = vld [vmem:[#allocation8 + $0x528] sm:$0xff] }
 0x163   : > { %v626_v3 = vmul.f32 %v2972_v16, %v2946_v60  ;;  %v3001_v6 = vadd.f32 %v2807_v12, %v761_v13  ;;  %v3005_v29 = vadd.f32 %v2813_v33, %v762_v1  ;;  %v620_v57 = vmul.f32 %v2933_v53, %v619_v45  ;;  %1291 = vmatpush.msrb.mxu0 %v903_v15  ;;  %v886_v15 = vld [vmem:[#allocation8 + $0x1f8] sm:$0xff] }
 0x164   : > { %1054 = vmatmul.f32.gmra.mxu0 %v2976_v11  ;;  %v473_v4 = vmul.f32 %v2967_v47, %v2967_v47  ;;  %v474_v39 = vmul.f32 %v2970_v10, %v2970_v10  ;;  %1119 = vmatmul.f32.gmra.mxu1 %v2980_v44  ;;  %v763_v13 = vmul.f32 %v2803_v8, %v725_v46  ;;  %vm632_vm7 = vweird.f32 %v2972_v16  ;;  %v987_v46 = vld [vmem:[#allocation8 + $0x520] sm:$0xff] }
 0x165   : > { %1184 = vmatmul.f32.gmra.mxu2 %v2976_v11  ;;  %1249 = vmatmul.f32.gmra.mxu3 %v2980_v44  ;;  %v627_v62 = vmul.f32 %v2972_v16, %v626_v3  ;;  %v764_v61 = vmul.f32 %v2805_v9, %v726_v0  ;;  %v624_v35 = vsel %vm623_vm5, %v2933_v53, %v620_v57  ;;  %vm633_vm8 = vmor %vm631_vm6, %vm632_vm7  ;;  %v982_v0 = vld [vmem:[#allocation8 + $0x4f8] sm:$0xff] }
 0x166   : > { %v520_v14 = vadd.f32 %v474_v39, %v473_v4  ;;  %v898_v4 = vld [vmem:[#allocation8 + $0x258] sm:$0xff]  ;;  %v897_v39 = vld [vmem:[#allocation8 + $0x250] sm:$0xff]  ;;  %1356 = vmatpush.msrb.mxu1 %v999_v58  ;;  %1487 = vmatpush.msrb.mxu3 %v994_v59  ;;  %v3022_v1 = vadd.f32 %v2807_v12, %v763_v13  ;;  %v727_v45 = vmul.f32 %v624_v35, %v2720_v42 }
 0x167   : > { %v628_v3 = vmul.f32 0.5, %v627_v62  ;;  %1422 = vmatpush.msrb.mxu2 %v898_v4  ;;  %1292 = vmatpush.msrb.mxu0 %v897_v39  ;;  %v3026_v53 = vadd.f32 %v2813_v33, %v764_v61  ;;  %v728_v62 = vmul.f32 %v624_v35, %v2723_v43  ;;  %v885_v39 = vld [vmem:[#allocation8 + $0x1f0] sm:$0xff]  ;;  %v976_v35 = vld [vmem:[#allocation8 + $0x4c8] sm:$0xff] }
 0x168   : > { %521 = vadd.xlane.f32.xlu1 %v520_v14  ;;  %v993_v14 = vld [vmem:[#allocation8 + $0x550] sm:$0xff]  ;;  %1488 = vmatpush.msrb.mxu3 %v988_v24  ;;  %v765_v60 = vmul.f32 %v2803_v8, %v727_v45 }
 0x169   : > { %v629_v23 = vsub.f32 1.5, %v628_v3  ;;  %1357 = vmatpush.msrb.mxu1 %v993_v14  ;;  %1423 = vmatpush.msrb.mxu2 %v892_v37  ;;  %v766_v42 = vmul.f32 %v2805_v9, %v728_v62  ;;  %v981_v13 = vld [vmem:[#allocation8 + $0x4f0] sm:$0xff]  ;;  %v880_v14 = vld [vmem:[#allocation8 + $0x1c8] sm:$0xff] }
 0x16a   : > { %v3038_v25 = vadd.f32 %v2807_v12, %v765_v60  ;;  %1489 = vmatpush.msrb.mxu3 %v982_v0  ;;  %v1015_v60 = vld [vmem:[#allocation10] sm:$0x3f] }
 0x16b   : > { %v630_v63 = vmul.f32 %v2972_v16, %v629_v23  ;;  %v3042_v48 = vadd.f32 %v2813_v33, %v766_v42  ;;  %1358 = vmatpush.msrb.mxu1 %v987_v46  ;;  %1424 = vmatpush.msrb.mxu2 %v886_v15  ;;  %v970_v46 = vld [vmem:[#allocation8 + $0x498] sm:$0xff] }
 0x16c   : > { %1057 = vmatmul.f32.gmra.mxu0 %v3001_v6  ;;  %1122 = vmatmul.f32.gmra.mxu1 %v3005_v29 }
 0x16d   : > { %1187 = vmatmul.f32.gmra.mxu2 %v3001_v6  ;;  %1252 = vmatmul.f32.gmra.mxu3 %v3005_v29  ;;  %v634_v2 = vsel %vm633_vm8, %v2972_v16, %v630_v63 }
 0x16e   : > { %v729_v43 = vmul.f32 %v634_v2, %v2737_v50  ;;  %v730_v5 = vmul.f32 %v634_v2, %v2740_v51  ;;  %v891_v51 = vld [vmem:[#allocation8 + $0x220] sm:$0xff]  ;;  %1359 = vmatpush.msrb.mxu1 %v981_v13  ;;  %1425 = vmatpush.msrb.mxu2 %v880_v14 }
 0x16f   : > { %1293 = vmatpush.msrb.mxu0 %v891_v51  ;;  %1490 = vmatpush.msrb.mxu3 %v976_v35  ;;  %v3071_v51 = vperm.slane %v1015_v60, 0 }
 0x170   : > { %v767_v19 = vmul.f32 %v2803_v8, %v729_v43  ;;  %v768_v16 = vmul.f32 %v2805_v9, %v730_v5  ;;  %v879_v43 = vld [vmem:[#allocation8 + $0x1c0] sm:$0xff] }
 0x171   : > { %1294 = vmatpush.msrb.mxu0 %v885_v39  ;;  %v975_v5 = vld [vmem:[#allocation8 + $0x4c0] sm:$0xff]  ;;  %1491 = vmatpush.msrb.mxu3 %v970_v46 }
 0x172   : > { %v3052_v21 = vadd.f32 %v2807_v12, %v767_v19  ;;  %v3055_v50 = vadd.f32 %v2813_v33, %v768_v16  ;;  %v874_v19 = vld [vmem:[#allocation8 + $0x198] sm:$0xff]  ;;  %1360 = vmatpush.msrb.mxu1 %v975_v5  ;;  %v969_v5 = vld [vmem:[#allocation8 + $0x490] sm:$0xff] }
 0x173   : > { %1295 = vmatpush.msrb.mxu0 %v879_v43  ;;  %1426 = vmatpush.msrb.mxu2 %v874_v19  ;;  %v873_v43 = vld [vmem:[#allocation8 + $0x190] sm:$0xff]  ;;  %v868_v19 = vld [vmem:[#allocation8 + $0x168] sm:$0xff] }
 0x174   : > { %1060 = vmatmul.f32.gmra.mxu0 %v3022_v1  ;;  %1125 = vmatmul.f32.gmra.mxu1 %v3026_v53 }
 0x175   : > { %1190 = vmatmul.f32.gmra.mxu2 %v3022_v1  ;;  %1255 = vmatmul.f32.gmra.mxu3 %v3026_v53 }
 0x176   : > { %1296 = vmatpush.msrb.mxu0 %v873_v43  ;;  %1361 = vmatpush.msrb.mxu1 %v969_v5 }
 0x177   : > { %1427 = vmatpush.msrb.mxu2 %v868_v19 }
 0x17c   : > { %1063 = vmatmul.f32.gmra.mxu0 %v3038_v25  ;;  %1128 = vmatmul.f32.gmra.mxu1 %v3042_v48 }
 0x17d   : > { %1193 = vmatmul.f32.gmra.mxu2 %v3038_v25  ;;  %1258 = vmatmul.f32.gmra.mxu3 %v3042_v48 }
 0x184   : > { %1066 = vmatmul.f32.gmra.mxu0 %v3052_v21  ;;  %1131 = vmatmul.f32.gmra.mxu1 %v3055_v50 }
 0x185   : > { %1196 = vmatmul.f32.gmra.mxu2 %v3052_v21  ;;  %1261 = vmatmul.f32.gmra.mxu3 %v3055_v50 }
 0x1b3   : > { %v501_v57 = vpop.xlane.xlu2 %500 }
 0x1b4   : > { %v531_v3 = vmul.f32 %v501_v57, %v2620_v30 }
 0x1b6   : > { %v547_v58 = vadd.f32 1e-05, %v531_v3 }
 0x1b8   : > { %2171 = vrsqrt.f32 %v547_v58  ;;  %vm641_vm10 = vweird.f32 %v547_v58 }
 0x1bb   : > { %v507_v4 = vpop.xlane.xlu2 %506 }
 0x1bc   : > { %v533_v59 = vmul.f32 %v507_v4, %v2620_v30 }
 0x1be   : > { %v2172_v37 = vpop.eup %2171  ;;  %v3063_v61 = vadd.f32 1e-05, %v533_v59  ;;  %v504_v45 = vpop.xlane.xlu1 %503 }
 0x1bf   : > { %v636_v23 = vmul.f32 %v2172_v37, %v547_v58  ;;  %v532_v63 = vmul.f32 %v504_v45, %v2620_v30  ;;  %vm642_vm9 = vweird.f32 %v2172_v37 }
 0x1c0   : > { %2173 = vrsqrt.f32 %v3063_v61  ;;  %vm643_vm11 = vmor %vm641_vm10, %vm642_vm9  ;;  %vm661_vm12 = vweird.f32 %v3063_v61 }
 0x1c1   : > { %v637_v24 = vmul.f32 %v2172_v37, %v636_v23  ;;  %v3067_v2 = vadd.f32 1e-05, %v532_v63 }
 0x1c3   : > { %v638_v62 = vmul.f32 0.5, %v637_v24  ;;  %2175 = vrsqrt.f32 %v3067_v2  ;;  %v516_v57 = vpop.xlane.xlu2 %515  ;;  %vm651_vm0 = vweird.f32 %v3067_v2 }
 0x1c4   : > { %v536_v58 = vmul.f32 %v516_v57, %v2620_v30 }
 0x1c5   : > { %v639_v42 = vsub.f32 1.5, %v638_v62 }
 0x1c6   : > { %v3069_v16 = vpop.eup %2173  ;;  %v510_v14 = vpop.xlane.xlu0 %509  ;;  %v3100_v57 = vadd.f32 1e-05, %v536_v58  ;;  %v862_v58 = vld [vmem:[#allocation8 + $0x138] sm:$0xff] }
 0x1c7   : > { %v640_v15 = vmul.f32 %v2172_v37, %v639_v42  ;;  %v656_v0 = vmul.f32 %v3069_v16, %v3063_v61  ;;  %v534_v45 = vmul.f32 %v510_v14, %v2620_v30  ;;  %vm662_vm13 = vweird.f32 %v3069_v16  ;;  %1428 = vmatpush.msrb.mxu2 %v862_v58 }
 0x1c8   : > { %vm663_vm15 = vmor %vm661_vm12, %vm662_vm13  ;;  %vm691_vm8 = vweird.f32 %v3100_v57 }
 0x1c9   : > { %v644_v3 = vsel %vm643_vm11, %v2172_v37, %v640_v15  ;;  %v657_v4 = vmul.f32 %v3069_v16, %v656_v0  ;;  %v1046_v59 = vpop.f32.mrf.mxu0  ;;  %v1111_v23 = vpop.f32.mrf.mxu1  ;;  %v3088_v42 = vadd.f32 1e-05, %v534_v45 }
 0x1ca   : > { %v731_v39 = vmul.f32 %v644_v3, %v2777_v27  ;;  %v732_v13 = vmul.f32 %v644_v3, %v2780_v28  ;;  %v1047_v35 = vadd.f32 %v1046_v59, %v3071_v51  ;;  %v3086_v63 = vpop.eup %2175  ;;  %v3090_v28 = vperm.slane %v1015_v60, 1  ;;  %v964_v3 = vld [vmem:[#allocation8 + $0x468] sm:$0xff] }
 0x1cb   : > { %v658_v24 = vmul.f32 0.5, %v657_v4  ;;  %v646_v0 = vmul.f32 %v3086_v63, %v3067_v2  ;;  %2177 = vrsqrt.f32 %v3088_v42  ;;  %1492 = vmatpush.msrb.mxu3 %v964_v3  ;;  %vm652_vm14 = vweird.f32 %v3086_v63 }
 0x1cc   : > { %v769_v62 = vmul.f32 %v2803_v8, %v731_v39  ;;  %v770_v37 = vmul.f32 %v2805_v9, %v732_v13  ;;  %v1112_v27 = vadd.f32 %v1111_v23, %v1047_v35  ;;  %v867_v39 = vld [vmem:[#allocation8 + $0x160] sm:$0xff]  ;;  %v513_v14 = vpop.xlane.xlu1 %512  ;;  %2179 = vrsqrt.f32 %v3100_v57  ;;  %vm653_vm1 = vmor %vm651_vm0, %vm652_vm14 }
 0x1cd   : > { %v659_v4 = vsub.f32 1.5, %v658_v24  ;;  %v647_v60 = vmul.f32 %v3086_v63, %v646_v0  ;;  %v963_v13 = vld [vmem:[#allocation8 + $0x460] sm:$0xff]  ;;  %v958_v24 = vld [vmem:[#allocation8 + $0x438] sm:$0xff]  ;;  %1297 = vmatpush.msrb.mxu0 %v867_v39  ;;  %vm671_vm2 = vweird.f32 %v3088_v42 }
 0x1ce   : > { %v3093_v46 = vadd.f32 %v2807_v12, %v769_v62  ;;  %v3096_v15 = vadd.f32 %v2813_v33, %v770_v37  ;;  %1809 = vst [vmem:[%s3103_s29] sm:$0xff] %v1112_v27  ;;  %v535_v62 = vmul.f32 %v513_v14, %v2620_v30  ;;  %1362 = vmatpush.msrb.mxu1 %v963_v13 }
 0x1cf   : > { %v648_v45 = vmul.f32 0.5, %v647_v60  ;;  %v660_v27 = vmul.f32 %v3069_v16, %v659_v4  ;;  %1493 = vmatpush.msrb.mxu3 %v958_v24 }
 0x1d0   : > { %v1176_v59 = vpop.f32.mrf.mxu2  ;;  %1069 = vmatmul.f32.gmra.mxu0 %v3093_v46  ;;  %1134 = vmatmul.f32.gmra.mxu1 %v3096_v15  ;;  %v1241_v23 = vpop.f32.mrf.mxu3  ;;  %v3119_v60 = vadd.f32 1e-05, %v535_v62 }
 0x1d1   : > { %v1177_v35 = vadd.f32 %v1176_v59, %v3090_v28  ;;  %1199 = vmatmul.f32.gmra.mxu2 %v3093_v46  ;;  %1264 = vmatmul.f32.gmra.mxu3 %v3096_v15  ;;  %v1049_v37 = vpop.f32.mrf.mxu0  ;;  %v1114_v19 = vpop.f32.mrf.mxu1  ;;  %v649_v3 = vsub.f32 1.5, %v648_v45  ;;  %v664_v14 = vsel %vm663_vm15, %v3069_v16, %v660_v27 }
 0x1d2   : > { %v1050_v5 = vadd.f32 %v1049_v37, %v3071_v51  ;;  %v3121_v59 = vpop.eup %2177  ;;  %2181 = vrsqrt.f32 %v3119_v60  ;;  %v735_v37 = vmul.f32 %v664_v14, %v2783_v31  ;;  %v736_v16 = vmul.f32 %v664_v14, %v2789_v34  ;;  %v952_v34 = vld [vmem:[#allocation8 + $0x408] sm:$0xff] }
 0x1d3   : > { %v1242_v43 = vadd.f32 %v1241_v23, %v1177_v35  ;;  %v519_v0 = vpop.xlane.xlu0 %518  ;;  %v650_v13 = vmul.f32 %v3086_v63, %v649_v3  ;;  %v666_v58 = vmul.f32 %v3121_v59, %v3088_v42  ;;  %v3134_v35 = vpop.eup %2179  ;;  %v856_v3 = vld [vmem:[#allocation8 + $0x108] sm:$0xff]  ;;  %vm672_vm3 = vweird.f32 %v3121_v59  ;;  %1494 = vmatpush.msrb.mxu3 %v952_v34 }
 0x1d4   : > { %v1115_v39 = vadd.f32 %v1114_v19, %v1050_v5  ;;  %v537_v4 = vmul.f32 %v519_v0, %v2620_v30  ;;  %v861_v0 = vld [vmem:[#allocation8 + $0x130] sm:$0xff]  ;;  %1429 = vmatpush.msrb.mxu2 %v856_v3  ;;  %v951_v3 = vld [vmem:[#allocation8 + $0x400] sm:$0xff]  ;;  %vm673_vm4 = vmor %vm671_vm2, %vm672_vm3  ;;  %vm681_vm5 = vweird.f32 %v3119_v60  ;;  %vm692_vm9 = vweird.f32 %v3134_v35 }
 0x1d5   : > { %1810 = vst [vmem:[%s3103_s29 + $0x8] sm:$0xff] %v1242_v43  ;;  %v654_v23 = vsel %vm653_vm1, %v3086_v63, %v650_v13  ;;  %v667_v61 = vmul.f32 %v3121_v59, %v666_v58  ;;  %v957_v63 = vld [vmem:[#allocation8 + $0x430] sm:$0xff]  ;;  %1298 = vmatpush.msrb.mxu0 %v861_v0  ;;  %vm693_vm10 = vmor %vm691_vm8, %vm692_vm9 }
 0x1d6   : > { %1815 = vst [vmem:[%s3103_s29 + $0x30] sm:$0xff] %v1115_v39  ;;  %v3138_v24 = vadd.f32 1e-05, %v537_v4  ;;  %v733_v45 = vmul.f32 %v654_v23, %v2819_v55  ;;  %v734_v2 = vmul.f32 %v654_v23, %v2822_v41  ;;  %v686_v55 = vmul.f32 %v3134_v35, %v3100_v57  ;;  %1363 = vmatpush.msrb.mxu1 %v957_v63 }
 0x1d7   : > { %v668_v27 = vmul.f32 0.5, %v667_v61 }
 0x1d8   : > { %v1179_v62 = vpop.f32.mrf.mxu2  ;;  %v1244_v5 = vpop.f32.mrf.mxu3  ;;  %v771_v39 = vmul.f32 %v2803_v8, %v733_v45  ;;  %v772_v4 = vmul.f32 %v2805_v9, %v734_v2  ;;  %2183 = vrsqrt.f32 %v3138_v24  ;;  %v687_v0 = vmul.f32 %v3134_v35, %v686_v55  ;;  %v849_v55 = vld [vmem:[#allocation8 + $0xd0] sm:$0xff]  ;;  %1364 = vmatpush.msrb.mxu1 %v951_v3 }
 0x1d9   : > { %v1180_v43 = vadd.f32 %v1179_v62, %v3090_v28  ;;  %v1052_v19 = vpop.f32.mrf.mxu0  ;;  %v1117_v31 = vpop.f32.mrf.mxu1  ;;  %v669_v13 = vsub.f32 1.5, %v668_v27  ;;  %v773_v62 = vmul.f32 %v2803_v8, %v735_v37  ;;  %v850_v37 = vld [vmem:[#allocation8 + $0xd8] sm:$0xff]  ;;  %vm701_vm11 = vweird.f32 %v3138_v24 }
 0x1da   : > { %v1053_v41 = vadd.f32 %v1052_v19, %v3071_v51  ;;  %v3152_v23 = vpop.eup %2181  ;;  %v3155_v61 = vadd.f32 %v2807_v12, %v771_v39  ;;  %v3158_v45 = vadd.f32 %v2813_v33, %v772_v4  ;;  %v774_v19 = vmul.f32 %v2805_v9, %v736_v16  ;;  %v946_v16 = vld [vmem:[#allocation8 + $0x3d8] sm:$0xff]  ;;  %1430 = vmatpush.msrb.mxu2 %v850_v37 }
 0x1db   : > { %v1245_v58 = vadd.f32 %v1244_v5, %v1180_v43  ;;  %v522_v14 = vpop.xlane.xlu1 %521  ;;  %v670_v27 = vmul.f32 %v3121_v59, %v669_v13  ;;  %v676_v43 = vmul.f32 %v3152_v23, %v3119_v60  ;;  %v855_v5 = vld [vmem:[#allocation8 + $0x100] sm:$0xff]  ;;  %1495 = vmatpush.msrb.mxu3 %v946_v16  ;;  %vm682_vm6 = vweird.f32 %v3152_v23 }
 0x1dc   : > { %3668 = vst [vmem:[#allocation16_spill] sm:$0xff] %v3155_v61  ;;  %v1118_v2 = vadd.f32 %v1117_v31, %v1053_v41  ;;  %1072 = vmatmul.f32.gmra.mxu0 %v3155_v61  ;;  %1137 = vmatmul.f32.gmra.mxu1 %v3158_v45  ;;  %v538_v63 = vmul.f32 %v522_v14, %v2620_v30  ;;  %v945_v41 = vld [vmem:[#allocation8 + $0x3d0] sm:$0xff]  ;;  %v844_v14 = vld [vmem:[#allocation8 + $0xa8] sm:$0xff]  ;;  %vm683_vm7 = vmor %vm681_vm5, %vm682_vm6 }
 0x1dd   : > { %3669 = vst [vmem:[#allocation17_spill] sm:$0xff] %v3158_v45  ;;  %v677_v39 = vmul.f32 %v3152_v23, %v676_v43  ;;  %1202 = vmatmul.f32.gmra.mxu2 %v3155_v61  ;;  %v674_v4 = vsel %vm673_vm4, %v3121_v59, %v670_v27  ;;  %1267 = vmatmul.f32.gmra.mxu3 %v3158_v45  ;;  %v688_v27 = vmul.f32 0.5, %v687_v0  ;;  %v831_v60 = vld [vmem:[#allocation8 + $0x40] sm:$0xff] }
 0x1de   : > { %1816 = vst [vmem:[%s3103_s29 + $0x38] sm:$0xff] %v1245_v58  ;;  %1299 = vmatpush.msrb.mxu0 %v855_v5  ;;  %v3180_v30 = vpop.eup %2183  ;;  %v3183_v31 = vadd.f32 %v2807_v12, %v773_v62  ;;  %v3185_v42 = vadd.f32 1e-05, %v538_v63  ;;  %v3188_v59 = vadd.f32 %v2813_v33, %v774_v19  ;;  %v939_v63 = vld [vmem:[#allocation8 + $0x3a0] sm:$0xff]  ;;  %v737_v45 = vmul.f32 %v674_v4, %v2860_v54  ;;  %v934_v54 = vld [vmem:[#allocation8 + $0x378] sm:$0xff] }
 0x1df   : > { %1821 = vst [vmem:[%s3103_s29 + $0x60] sm:$0xff] %v1118_v2  ;;  %v678_v34 = vmul.f32 0.5, %v677_v39  ;;  %v940_v2 = vld [vmem:[#allocation8 + $0x3a8] sm:$0xff]  ;;  %v843_v39 = vld [vmem:[#allocation8 + $0xa0] sm:$0xff]  ;;  %v738_v3 = vmul.f32 %v674_v4, %v2869_v32  ;;  %1365 = vmatpush.msrb.mxu1 %v945_v41  ;;  %v696_v19 = vmul.f32 %v3180_v30, %v3138_v24  ;;  %1431 = vmatpush.msrb.mxu2 %v844_v14  ;;  %v838_v4 = vld [vmem:[#allocation8 + $0x78] sm:$0xff]  ;;  %vm702_vm12 = vweird.f32 %v3180_v30 }
 0x1e0   : > { %v1182_v13 = vpop.f32.mrf.mxu2  ;;  %v1247_v58 = vpop.f32.mrf.mxu3  ;;  %1300 = vmatpush.msrb.mxu0 %v849_v55  ;;  %2185 = vrsqrt.f32 %v3185_v42  ;;  %1496 = vmatpush.msrb.mxu3 %v940_v2  ;;  %v689_v55 = vsub.f32 1.5, %v688_v27  ;;  %v837_v41 = vld [vmem:[#allocation8 + $0x70] sm:$0xff]  ;;  %v832_v14 = vld [vmem:[#allocation8 + $0x48] sm:$0xff]  ;;  %vm703_vm13 = vmor %vm701_vm11, %vm702_vm12  ;;  %vm711_vm14 = vweird.f32 %v3185_v42 }
 0x1e1   : > { %v1183_v43 = vadd.f32 %v1182_v13, %v3090_v28  ;;  %v1055_v5 = vpop.f32.mrf.mxu0  ;;  %v1120_v62 = vpop.f32.mrf.mxu1  ;;  %v679_v37 = vsub.f32 1.5, %v678_v34  ;;  %1366 = vmatpush.msrb.mxu1 %v939_v63  ;;  %v775_v34 = vmul.f32 %v2803_v8, %v737_v45  ;;  %v776_v13 = vmul.f32 %v2805_v9, %v738_v3  ;;  %1432 = vmatpush.msrb.mxu2 %v838_v4  ;;  %v928_v2 = vld [vmem:[#allocation8 + $0x348] sm:$0xff]  ;;  %v918_v24 = vld [vmem:[#allocation8 + $0x2f8] sm:$0xff] }
 0x1e2   : > { %v1056_v61 = vadd.f32 %v1055_v5, %v3071_v51  ;;  %1301 = vmatpush.msrb.mxu0 %v843_v39  ;;  %1497 = vmatpush.msrb.mxu3 %v934_v54 }
 0x1e3   : > { %v1248_v0 = vadd.f32 %v1247_v58, %v1183_v43  ;;  %v680_v32 = vmul.f32 %v3152_v23, %v679_v37  ;;  %v933_v58 = vld [vmem:[#allocation8 + $0x370] sm:$0xff]  ;;  %1433 = vmatpush.msrb.mxu2 %v832_v14  ;;  %v3220_v3 = vadd.f32 %v2807_v12, %v775_v34  ;;  %v927_v34 = vld [vmem:[#allocation8 + $0x340] sm:$0xff] }
 0x1e4   : > { %v1121_v16 = vadd.f32 %v1120_v62, %v1056_v61  ;;  %1075 = vmatmul.f32.gmra.mxu0 %v3183_v31  ;;  %1140 = vmatmul.f32.gmra.mxu1 %v3188_v59  ;;  %v697_v61 = vmul.f32 %v3180_v30, %v696_v19  ;;  %v690_v62 = vmul.f32 %v3134_v35, %v689_v55 }
 0x1e5   : > { %1822 = vst [vmem:[%s3103_s29 + $0x68] sm:$0xff] %v1248_v0  ;;  %1205 = vmatmul.f32.gmra.mxu2 %v3183_v31  ;;  %1270 = vmatmul.f32.gmra.mxu3 %v3188_v59  ;;  %v684_v45 = vsel %vm683_vm7, %v3152_v23, %v680_v32  ;;  %v3223_v23 = vadd.f32 %v2813_v33, %v776_v13  ;;  %v826_v13 = vld [vmem:[#allocation8 + $0x18] sm:$0xff] }
 0x1e6   : > { %1827 = vst [vmem:[%s3103_s29 + $0x90] sm:$0xff] %v1121_v16  ;;  %1302 = vmatpush.msrb.mxu0 %v837_v41  ;;  %1367 = vmatpush.msrb.mxu1 %v933_v58  ;;  %v3214_v5 = vpop.eup %2185  ;;  %v739_v19 = vmul.f32 %v684_v45, %v2908_v40  ;;  %v740_v57 = vmul.f32 %v684_v45, %v2912_v49  ;;  %v698_v0 = vmul.f32 0.5, %v697_v61  ;;  %v922_v61 = vld [vmem:[#allocation8 + $0x318] sm:$0xff]  ;;  %v825_v45 = vld [vmem:[#allocation8 + $0x10] sm:$0xff] }
 0x1e7   : > { %1498 = vmatpush.msrb.mxu3 %v928_v2  ;;  %v706_v32 = vmul.f32 %v3214_v5, %v3185_v42  ;;  %v694_v40 = vsel %vm693_vm10, %v3134_v35, %v690_v62  ;;  %1434 = vmatpush.msrb.mxu2 %v826_v13  ;;  %vm712_vm15 = vweird.f32 %v3214_v5 }
 0x1e8   : > { %v1185_v27 = vpop.f32.mrf.mxu2  ;;  %v1250_v43 = vpop.f32.mrf.mxu3  ;;  %1303 = vmatpush.msrb.mxu0 %v831_v60  ;;  %v777_v49 = vmul.f32 %v2803_v8, %v739_v19  ;;  %v778_v55 = vmul.f32 %v2805_v9, %v740_v57  ;;  %v699_v41 = vsub.f32 1.5, %v698_v0  ;;  %1368 = vmatpush.msrb.mxu1 %v927_v34  ;;  %v741_v62 = vmul.f32 %v694_v40, %v2838_v38  ;;  %vm713_vm0 = vmor %vm711_vm14, %vm712_vm15 }
 0x1e9   : > { %v1058_v39 = vpop.f32.mrf.mxu0  ;;  %v1123_v63 = vpop.f32.mrf.mxu1  ;;  %v1186_v37 = vadd.f32 %v1185_v27, %v3090_v28  ;;  %v707_v58 = vmul.f32 %v3214_v5, %v706_v32  ;;  %v921_v27 = vld [vmem:[#allocation8 + $0x310] sm:$0xff]  ;;  %1499 = vmatpush.msrb.mxu3 %v922_v61  ;;  %1679 = vmatpush.msra.mxu2 %v918_v24 }
 0x1ea   : > { %v1059_v54 = vadd.f32 %v1058_v39, %v3071_v51  ;;  %1304 = vmatpush.msrb.mxu0 %v825_v45  ;;  %v742_v39 = vmul.f32 %v694_v40, %v2853_v17  ;;  %1369 = vmatpush.msrb.mxu1 %v921_v27  ;;  %v3251_v19 = vadd.f32 %v2813_v33, %v778_v55  ;;  %v917_v40 = vld [vmem:[#allocation8 + $0x2f0] sm:$0xff] }
 0x1eb   : > { %v1251_v16 = vadd.f32 %v1250_v43, %v1186_v37  ;;  %v3248_v37 = vadd.f32 %v2807_v12, %v777_v49  ;;  %v700_v57 = vmul.f32 %v3180_v30, %v699_v41  ;;  %v779_v38 = vmul.f32 %v2803_v8, %v741_v62  ;;  %v1008_v62 = vld [vmem:[#allocation8 + $0x5c8] sm:$0xff] }
 0x1ec   : > { %1078 = vmatmul.f32.gmra.mxu0 %v3220_v3  ;;  %1143 = vmatmul.f32.gmra.mxu1 %v3223_v23  ;;  %v1124_v4 = vadd.f32 %v1123_v63, %v1059_v54  ;;  %v708_v54 = vmul.f32 0.5, %v707_v58  ;;  %v780_v17 = vmul.f32 %v2805_v9, %v742_v39 }
 0x1ed   : > { %1828 = vst [vmem:[%s3103_s29 + $0x98] sm:$0xff] %v1251_v16  ;;  %1208 = vmatmul.f32.gmra.mxu2 %v3220_v3  ;;  %1273 = vmatmul.f32.gmra.mxu3 %v3223_v23  ;;  %v704_v16 = vsel %vm703_vm13, %v3180_v30, %v700_v57 }
 0x1ee   : > { %1833 = vst [vmem:[%s3103_s29 + $0xc0] sm:$0xff] %v1124_v4  ;;  %v1014_v4 = vld [vmem:[#allocation8 + $0x5f8] sm:$0xff]  ;;  %v709_v49 = vsub.f32 1.5, %v708_v54  ;;  %1549 = vmatpush.msra.mxu0 %v917_v40  ;;  %v743_v58 = vmul.f32 %v704_v16, %v2939_v36  ;;  %v744_v45 = vmul.f32 %v704_v16, %v2942_v56  ;;  %v1013_v56 = vld [vmem:[#allocation8 + $0x5f0] sm:$0xff] }
 0x1ef   : > { %1744 = vmatpush.msra.mxu3 %v1014_v4  ;;  %1614 = vmatpush.msra.mxu1 %v1013_v56  ;;  %v893_v56 = vld [vmem:[#allocation8 + $0x230] sm:$0xff] }
 0x1f0   : > { %v1188_v14 = vpop.f32.mrf.mxu2  ;;  %v1253_v2 = vpop.f32.mrf.mxu3  ;;  %v781_v36 = vmul.f32 %v2803_v8, %v743_v58  ;;  %v782_v42 = vmul.f32 %v2805_v9, %v744_v45 }
 0x1f1   : > { %v1189_v35 = vadd.f32 %v1188_v14, %v3090_v28  ;;  %v1061_v43 = vpop.f32.mrf.mxu0  ;;  %v1126_v60 = vpop.f32.mrf.mxu1  ;;  %v3271_v14 = vadd.f32 %v2807_v12, %v779_v38  ;;  %1745 = vmatpush.msra.mxu3 %v1008_v62  ;;  %v888_v62 = vld [vmem:[#allocation8 + $0x208] sm:$0xff] }
 0x1f2   : > { %v1062_v63 = vadd.f32 %v1061_v43, %v3071_v51  ;;  %v3289_v38 = vadd.f32 %v2807_v12, %v781_v36  ;;  %v3293_v16 = vadd.f32 %v2813_v33, %v782_v42  ;;  %v894_v36 = vld [vmem:[#allocation8 + $0x238] sm:$0xff] }
 0x1f3   : > { %v1254_v0 = vadd.f32 %v1253_v2, %v1189_v35  ;;  %v3274_v2 = vadd.f32 %v2813_v33, %v780_v17  ;;  %v710_v35 = vmul.f32 %v3214_v5, %v709_v49  ;;  %v990_v42 = vld [vmem:[#allocation8 + $0x538] sm:$0xff] }
 0x1f4   : > { %v1127_v32 = vadd.f32 %v1126_v60, %v1062_v63  ;;  %1081 = vmatmul.f32.gmra.mxu0 %v3248_v37  ;;  %1146 = vmatmul.f32.gmra.mxu1 %v3251_v19  ;;  %v912_v60 = vld [vmem:[#allocation8 + $0x2c8] sm:$0xff] }
 0x1f5   : > { %1834 = vst [vmem:[%s3103_s29 + $0xc8] sm:$0xff] %v1254_v0  ;;  %1211 = vmatmul.f32.gmra.mxu2 %v3248_v37  ;;  %1276 = vmatmul.f32.gmra.mxu3 %v3251_v19  ;;  %v714_v39 = vsel %vm713_vm0, %v3214_v5, %v710_v35  ;;  %v911_v0 = vld [vmem:[#allocation8 + $0x2c0] sm:$0xff]  ;;  %v900_v35 = vld [vmem:[#allocation8 + $0x268] sm:$0xff] }
 0x1f6   : > { %1839 = vst [vmem:[%s3103_s29 + $0xf0] sm:$0xff] %v1127_v32  ;;  %1680 = vmatpush.msra.mxu2 %v912_v60  ;;  %1550 = vmatpush.msra.mxu0 %v911_v0  ;;  %v745_v5 = vmul.f32 %v714_v39, %v2967_v47  ;;  %v746_v24 = vmul.f32 %v714_v39, %v2970_v10  ;;  %v1007_v47 = vld [vmem:[#allocation8 + $0x5c0] sm:$0xff]  ;;  %v906_v10 = vld [vmem:[#allocation8 + $0x298] sm:$0xff]  ;;  %v989_v60 = vld [vmem:[#allocation8 + $0x530] sm:$0xff] }
 0x1f7   : > { %1615 = vmatpush.msra.mxu1 %v1007_v47  ;;  %v984_v39 = vld [vmem:[#allocation8 + $0x508] sm:$0xff]  ;;  %v882_v0 = vld [vmem:[#allocation8 + $0x1d8] sm:$0xff]  ;;  %v965_v47 = vld [vmem:[#allocation8 + $0x470] sm:$0xff] }
 0x1f8   : > { %v1191_v55 = vpop.f32.mrf.mxu2  ;;  %v1256_v41 = vpop.f32.mrf.mxu3  ;;  %1681 = vmatpush.msra.mxu2 %v906_v10  ;;  %v864_v10 = vld [vmem:[#allocation8 + $0x148] sm:$0xff] }
 0x1f9   : > { %v1192_v34 = vadd.f32 %v1191_v55, %v3090_v28  ;;  %v1064_v13 = vpop.f32.mrf.mxu0  ;;  %v1129_v61 = vpop.f32.mrf.mxu1  ;;  %v783_v55 = vmul.f32 %v2803_v8, %v745_v5  ;;  %v876_v5 = vld [vmem:[#allocation8 + $0x1a8] sm:$0xff] }
 0x1fa   : > { %v1065_v30 = vadd.f32 %v1064_v13, %v3071_v51  ;;  %1682 = vmatpush.msra.mxu2 %v900_v35 }
 0x1fb   : > { %v1257_v27 = vadd.f32 %v1256_v41, %v1192_v34  ;;  %v784_v41 = vmul.f32 %v2805_v9, %v746_v24  ;;  %v1002_v34 = vld [vmem:[#allocation8 + $0x598] sm:$0xff]  ;;  %v3307_v45 = vadd.f32 %v2807_v12, %v783_v55  ;;  %v899_v12 = vld [vmem:[#allocation8 + $0x260] sm:$0xff]  ;;  %v972_v24 = vld [vmem:[#allocation8 + $0x4a8] sm:$0xff] }
 0x1fc   : > { %v1130_v43 = vadd.f32 %v1129_v61, %v1065_v30  ;;  %1084 = vmatmul.f32.gmra.mxu0 %v3271_v14  ;;  %1149 = vmatmul.f32.gmra.mxu1 %v3274_v2  ;;  %v905_v61 = vld [vmem:[#allocation8 + $0x290] sm:$0xff]  ;;  %v966_v55 = vld [vmem:[#allocation8 + $0x478] sm:$0xff] }
 0x1fd   : > { %1840 = vst [vmem:[%s3103_s29 + $0xf8] sm:$0xff] %v1257_v27  ;;  %1214 = vmatmul.f32.gmra.mxu2 %v3271_v14  ;;  %1279 = vmatmul.f32.gmra.mxu3 %v3274_v2  ;;  %v3310_v8 = vadd.f32 %v2813_v33, %v784_v41  ;;  %v1001_v27 = vld [vmem:[#allocation8 + $0x590] sm:$0xff]  ;;  %v995_v33 = vld [vmem:[#allocation8 + $0x560] sm:$0xff] }
 0x1fe   : > { %1845 = vst [vmem:[%s3103_s29 + $0x120] sm:$0xff] %v1130_v43  ;;  %1746 = vmatpush.msra.mxu3 %v1002_v34  ;;  %1551 = vmatpush.msra.mxu0 %v905_v61  ;;  %v996_v43 = vld [vmem:[#allocation8 + $0x568] sm:$0xff]  ;;  %v869_v41 = vld [vmem:[#allocation8 + $0x170] sm:$0xff]  ;;  %v959_v61 = vld [vmem:[#allocation8 + $0x440] sm:$0xff] }
 0x1ff   : > { %1616 = vmatpush.msra.mxu1 %v1001_v27  ;;  %1683 = vmatpush.msra.mxu2 %v894_v36  ;;  %v960_v34 = vld [vmem:[#allocation8 + $0x448] sm:$0xff] }
 0x200   : > { %v1194_v63 = vpop.f32.mrf.mxu2  ;;  %v1259_v57 = vpop.f32.mrf.mxu3  ;;  %1747 = vmatpush.msra.mxu3 %v996_v43  ;;  %1552 = vmatpush.msra.mxu0 %v899_v12  ;;  %v857_v12 = vld [vmem:[#allocation8 + $0x110] sm:$0xff]  ;;  %v852_v36 = vld [vmem:[#allocation8 + $0xe8] sm:$0xff] }
 0x201   : > { %v1195_v54 = vadd.f32 %v1194_v63, %v3090_v28  ;;  %v1067_v32 = vpop.f32.mrf.mxu0  ;;  %v1132_v40 = vpop.f32.mrf.mxu1  ;;  %1617 = vmatpush.msra.mxu1 %v995_v33  ;;  %1684 = vmatpush.msra.mxu2 %v888_v62  ;;  %v887_v63 = vld [vmem:[#allocation8 + $0x200] sm:$0xff]  ;;  %v953_v33 = vld [vmem:[#allocation8 + $0x410] sm:$0xff] }
 0x202   : > { %v1068_v17 = vadd.f32 %v1067_v32, %v3071_v51  ;;  %1748 = vmatpush.msra.mxu3 %v990_v42  ;;  %1553 = vmatpush.msra.mxu0 %v893_v56  ;;  %v881_v32 = vld [vmem:[#allocation8 + $0x1d0] sm:$0xff]  ;;  %v948_v42 = vld [vmem:[#allocation8 + $0x3e8] sm:$0xff] }
 0x203   : > { %v1260_v4 = vadd.f32 %v1259_v57, %v1195_v54  ;;  %1618 = vmatpush.msra.mxu1 %v989_v60  ;;  %v983_v57 = vld [vmem:[#allocation8 + $0x500] sm:$0xff]  ;;  %v978_v54 = vld [vmem:[#allocation8 + $0x4d8] sm:$0xff]  ;;  %1685 = vmatpush.msra.mxu2 %v882_v0 }
 0x204   : > { %v1133_v49 = vadd.f32 %v1132_v40, %v1068_v17  ;;  %1087 = vmatmul.f32.gmra.mxu0 %v3289_v38  ;;  %1152 = vmatmul.f32.gmra.mxu1 %v3293_v16  ;;  %v977_v17 = vld [vmem:[#allocation8 + $0x4d0] sm:$0xff]  ;;  %v971_v40 = vld [vmem:[#allocation8 + $0x4a0] sm:$0xff]  ;;  %v846_v0 = vld [vmem:[#allocation8 + $0xb8] sm:$0xff] }
 0x205   : > { %1846 = vst [vmem:[%s3103_s29 + $0x128] sm:$0xff] %v1260_v4  ;;  %1217 = vmatmul.f32.gmra.mxu2 %v3289_v38  ;;  %1282 = vmatmul.f32.gmra.mxu3 %v3293_v16  ;;  %v875_v4 = vld [vmem:[#allocation8 + $0x1a0] sm:$0xff] }
 0x206   : > { %1851 = vst [vmem:[%s3103_s29 + $0x150] sm:$0xff] %v1133_v49  ;;  %1749 = vmatpush.msra.mxu3 %v984_v39  ;;  %1554 = vmatpush.msra.mxu0 %v887_v63  ;;  %v870_v49 = vld [vmem:[#allocation8 + $0x178] sm:$0xff]  ;;  %v851_v63 = vld [vmem:[#allocation8 + $0xe0] sm:$0xff] }
 0x207   : > { %1619 = vmatpush.msra.mxu1 %v983_v57  ;;  %1686 = vmatpush.msra.mxu2 %v876_v5  ;;  %v947_v57 = vld [vmem:[#allocation8 + $0x3e0] sm:$0xff] }
 0x208   : > { %v1197_v13 = vpop.f32.mrf.mxu2  ;;  %v1262_v30 = vpop.f32.mrf.mxu3  ;;  %1750 = vmatpush.msra.mxu3 %v978_v54  ;;  %1555 = vmatpush.msra.mxu0 %v881_v32  ;;  %v942_v54 = vld [vmem:[#allocation8 + $0x3b8] sm:$0xff] }
 0x209   : > { %v1198_v58 = vadd.f32 %v1197_v13, %v3090_v28  ;;  %1620 = vmatpush.msra.mxu1 %v977_v17  ;;  %1687 = vmatpush.msra.mxu2 %v870_v49  ;;  %v863_v13 = vld [vmem:[#allocation8 + $0x140] sm:$0xff]  ;;  %v845_v49 = vld [vmem:[#allocation8 + $0xb0] sm:$0xff] }
 0x20a   : > { %1751 = vmatpush.msra.mxu3 %v972_v24  ;;  %1556 = vmatpush.msra.mxu0 %v875_v4  ;;  %v3670_v4 = vld [vmem:[#allocation16_spill] sm:$0xff] }
 0x20b   : > { %v1263_v9 = vadd.f32 %v1262_v30, %v1198_v58  ;;  %1621 = vmatpush.msra.mxu1 %v971_v40  ;;  %1688 = vmatpush.msra.mxu2 %v864_v10  ;;  %v858_v58 = vld [vmem:[#allocation8 + $0x118] sm:$0xff]  ;;  %v3671_v40 = vld [vmem:[#allocation17_spill] sm:$0xff] }
 0x20c   : > { %1090 = vmatmul.f32.gmra.mxu0 %v3307_v45  ;;  %1155 = vmatmul.f32.gmra.mxu1 %v3310_v8  ;;  %v954_v30 = vld [vmem:[#allocation8 + $0x418] sm:$0xff] }
 0x20d   : > { %1852 = vst [vmem:[%s3103_s29 + $0x158] sm:$0xff] %v1263_v9  ;;  %1220 = vmatmul.f32.gmra.mxu2 %v3307_v45  ;;  %1285 = vmatmul.f32.gmra.mxu3 %v3310_v8 }
 0x20e   : > { %1752 = vmatpush.msra.mxu3 %v966_v55  ;;  %1557 = vmatpush.msra.mxu0 %v869_v41  ;;  %v941_v55 = vld [vmem:[#allocation8 + $0x3b0] sm:$0xff]  ;;  %v840_v41 = vld [vmem:[#allocation8 + $0x88] sm:$0xff] }
 0x20f   : > { %1622 = vmatpush.msra.mxu1 %v965_v47  ;;  %1689 = vmatpush.msra.mxu2 %v858_v58  ;;  %v936_v47 = vld [vmem:[#allocation8 + $0x388] sm:$0xff] }
 0x210   : > { %1753 = vmatpush.msra.mxu3 %v960_v34  ;;  %1558 = vmatpush.msra.mxu0 %v863_v13 }
 0x211   : > { %1623 = vmatpush.msra.mxu1 %v959_v61  ;;  %1690 = vmatpush.msra.mxu2 %v852_v36 }
 0x212   : > { %1754 = vmatpush.msra.mxu3 %v954_v30  ;;  %1559 = vmatpush.msra.mxu0 %v857_v12  ;;  %v834_v12 = vld [vmem:[#allocation8 + $0x58] sm:$0xff] }
 0x213   : > { %1624 = vmatpush.msra.mxu1 %v953_v33  ;;  %1691 = vmatpush.msra.mxu2 %v846_v0  ;;  %v930_v33 = vld [vmem:[#allocation8 + $0x358] sm:$0xff]  ;;  %v833_v0 = vld [vmem:[#allocation8 + $0x50] sm:$0xff] }
 0x214   : > { %1305 = vmatmul.f32.vlgmr.msrb.gmra.mxu0 %v2847_v20  ;;  %1370 = vmatmul.f32.vlgmr.msrb.gmra.mxu1 %v2850_v7 }
 0x215   : > { %1435 = vmatmul.f32.vlgmr.msrb.gmra.mxu2 %v2847_v20  ;;  %1500 = vmatmul.f32.vlgmr.msrb.gmra.mxu3 %v2850_v7 }
 0x216   : > { %1755 = vmatpush.msra.mxu3 %v948_v42  ;;  %1560 = vmatpush.msra.mxu0 %v851_v63 }
 0x217   : > { %1625 = vmatpush.msra.mxu1 %v947_v57  ;;  %1692 = vmatpush.msra.mxu2 %v840_v41 }
 0x218   : > { %1756 = vmatpush.msra.mxu3 %v942_v54  ;;  %1561 = vmatpush.msra.mxu0 %v845_v49  ;;  %v929_v54 = vld [vmem:[#allocation8 + $0x350] sm:$0xff] }
 0x219   : > { %1626 = vmatpush.msra.mxu1 %v941_v55  ;;  %1693 = vmatpush.msra.mxu2 %v834_v12 }
 0x21a   : > { %1757 = vmatpush.msra.mxu3 %v936_v47 }
 0x21c   : > { %1308 = vmatmul.f32.gmra.mxu0 %v2898_v22  ;;  %1373 = vmatmul.f32.gmra.mxu1 %v2901_v26 }
 0x21d   : > { %1438 = vmatmul.f32.gmra.mxu2 %v2898_v22  ;;  %1503 = vmatmul.f32.gmra.mxu3 %v2901_v26 }
 0x21e   : > { %1758 = vmatpush.msra.mxu3 %v930_v33 }
 0x224   : > { %1311 = vmatmul.f32.gmra.mxu0 %v2929_v18  ;;  %1376 = vmatmul.f32.gmra.mxu1 %v2936_v52 }
 0x225   : > { %1441 = vmatmul.f32.gmra.mxu2 %v2929_v18  ;;  %1506 = vmatmul.f32.gmra.mxu3 %v2936_v52 }
 0x22c   : > { %1314 = vmatmul.f32.gmra.mxu0 %v2976_v11  ;;  %1379 = vmatmul.f32.gmra.mxu1 %v2980_v44 }
 0x22d   : > { %1444 = vmatmul.f32.gmra.mxu2 %v2976_v11  ;;  %1509 = vmatmul.f32.gmra.mxu3 %v2980_v44 }
 0x234   : > { %1317 = vmatmul.f32.gmra.mxu0 %v3001_v6  ;;  %1382 = vmatmul.f32.gmra.mxu1 %v3005_v29 }
 0x235   : > { %1447 = vmatmul.f32.gmra.mxu2 %v3001_v6  ;;  %1512 = vmatmul.f32.gmra.mxu3 %v3005_v29 }
 0x23c   : > { %1320 = vmatmul.f32.gmra.mxu0 %v3022_v1  ;;  %1385 = vmatmul.f32.gmra.mxu1 %v3026_v53 }
 0x23d   : > { %1450 = vmatmul.f32.gmra.mxu2 %v3022_v1  ;;  %1515 = vmatmul.f32.gmra.mxu3 %v3026_v53 }
 0x244   : > { %1323 = vmatmul.f32.gmra.mxu0 %v3038_v25  ;;  %1388 = vmatmul.f32.gmra.mxu1 %v3042_v48 }
 0x245   : > { %1453 = vmatmul.f32.gmra.mxu2 %v3038_v25  ;;  %1518 = vmatmul.f32.gmra.mxu3 %v3042_v48 }
 0x24c   : > { %1326 = vmatmul.f32.gmra.mxu0 %v3052_v21  ;;  %1391 = vmatmul.f32.gmra.mxu1 %v3055_v50 }
 0x24d   : > { %v1070_v9 = vpop.f32.mrf.mxu0  ;;  %v1135_v35 = vpop.f32.mrf.mxu1  ;;  %1456 = vmatmul.f32.gmra.mxu2 %v3052_v21  ;;  %1521 = vmatmul.f32.gmra.mxu3 %v3055_v50 }
 0x24e   : > { %v1071_v27 = vadd.f32 %v1070_v9, %v3071_v51 }
 0x250   : > { %v1136_v43 = vadd.f32 %v1135_v35, %v1071_v27  ;;  %v839_v35 = vld [vmem:[#allocation8 + $0x80] sm:$0xff] }
 0x251   : > { %1562 = vmatpush.msra.mxu0 %v839_v35 }
 0x252   : > { %1857 = vst [vmem:[%s3103_s29 + $0x180] sm:$0xff] %v1136_v43  ;;  %v935_v43 = vld [vmem:[#allocation8 + $0x380] sm:$0xff] }
 0x253   : > { %1627 = vmatpush.msra.mxu1 %v935_v43  ;;  %1563 = vmatpush.msra.mxu0 %v833_v0 }
 0x254   : > { %v1200_v56 = vpop.f32.mrf.mxu2  ;;  %v1265_v62 = vpop.f32.mrf.mxu3  ;;  %1329 = vmatmul.f32.gmra.mxu0 %v3093_v46  ;;  %1394 = vmatmul.f32.gmra.mxu1 %v3096_v15 }
 0x255   : > { %v1201_v60 = vadd.f32 %v1200_v56, %v3090_v28  ;;  %1459 = vmatmul.f32.gmra.mxu2 %v3093_v46  ;;  %1524 = vmatmul.f32.gmra.mxu3 %v3096_v15 }
 0x256   : > { %1628 = vmatpush.msra.mxu1 %v929_v54 }
 0x257   : > { %v1266_v39 = vadd.f32 %v1265_v62, %v1201_v60 }
 0x259   : > { %1858 = vst [vmem:[%s3103_s29 + $0x188] sm:$0xff] %v1266_v39  ;;  %v1073_v32 = vpop.f32.mrf.mxu0  ;;  %v1138_v17 = vpop.f32.mrf.mxu1 }
 0x25a   : > { %v1074_v5 = vadd.f32 %v1073_v32, %v3071_v51  ;;  %v828_v32 = vld [vmem:[#allocation8 + $0x28] sm:$0xff] }
 0x25b   : > { %1694 = vmatpush.msra.mxu2 %v828_v32 }
 0x25c   : > { %v1139_v24 = vadd.f32 %v1138_v17, %v1074_v5  ;;  %1332 = vmatmul.f32.gmra.mxu0 %v3670_v4  ;;  %1397 = vmatmul.f32.gmra.mxu1 %v3671_v40  ;;  %v924_v17 = vld [vmem:[#allocation8 + $0x328] sm:$0xff] }
 0x25d   : > { %1462 = vmatmul.f32.gmra.mxu2 %v3670_v4  ;;  %1527 = vmatmul.f32.gmra.mxu3 %v3671_v40 }
 0x25e   : > { %1863 = vst [vmem:[%s3103_s29 + $0x1b0] sm:$0xff] %v1139_v24  ;;  %1759 = vmatpush.msra.mxu3 %v924_v17 }
 0x260   : > { %v1203_v10 = vpop.f32.mrf.mxu2  ;;  %v1268_v13 = vpop.f32.mrf.mxu3 }
 0x261   : > { %v1204_v34 = vadd.f32 %v1203_v10, %v3090_v28  ;;  %v1076_v61 = vpop.f32.mrf.mxu0  ;;  %v1141_v30 = vpop.f32.mrf.mxu1 }
 0x262   : > { %v1077_v58 = vadd.f32 %v1076_v61, %v3071_v51  ;;  %v923_v61 = vld [vmem:[#allocation8 + $0x320] sm:$0xff] }
 0x263   : > { %v1269_v9 = vadd.f32 %v1268_v13, %v1204_v34  ;;  %v827_v13 = vld [vmem:[#allocation8 + $0x20] sm:$0xff]  ;;  %1629 = vmatpush.msra.mxu1 %v923_v61 }
 0x264   : > { %v1142_v27 = vadd.f32 %v1141_v30, %v1077_v58  ;;  %1335 = vmatmul.f32.gmra.mxu0 %v3183_v31  ;;  %1400 = vmatmul.f32.gmra.mxu1 %v3188_v59 }
 0x265   : > { %1864 = vst [vmem:[%s3103_s29 + $0x1b8] sm:$0xff] %v1269_v9  ;;  %1465 = vmatmul.f32.gmra.mxu2 %v3183_v31  ;;  %1530 = vmatmul.f32.gmra.mxu3 %v3188_v59 }
 0x266   : > { %1869 = vst [vmem:[%s3103_s29 + $0x1e0] sm:$0xff] %v1142_v27  ;;  %1564 = vmatpush.msra.mxu0 %v827_v13 }
 0x268   : > { %v1206_v36 = vpop.f32.mrf.mxu2  ;;  %v1271_v56 = vpop.f32.mrf.mxu3 }
 0x269   : > { %v1207_v42 = vadd.f32 %v1206_v36, %v3090_v28  ;;  %v1079_v60 = vpop.f32.mrf.mxu0  ;;  %v1144_v39 = vpop.f32.mrf.mxu1 }
 0x26a   : > { %v1080_v62 = vadd.f32 %v1079_v60, %v3071_v51 }
 0x26b   : > { %v1272_v63 = vadd.f32 %v1271_v56, %v1207_v42 }
 0x26c   : > { %v1145_v57 = vadd.f32 %v1144_v39, %v1080_v62  ;;  %1338 = vmatmul.f32.gmra.mxu0 %v3220_v3  ;;  %1403 = vmatmul.f32.gmra.mxu1 %v3223_v23 }
 0x26d   : > { %1870 = vst [vmem:[%s3103_s29 + $0x1e8] sm:$0xff] %v1272_v63  ;;  %1468 = vmatmul.f32.gmra.mxu2 %v3220_v3  ;;  %1533 = vmatmul.f32.gmra.mxu3 %v3223_v23 }
 0x26e   : > { %1875 = vst [vmem:[%s3103_s29 + $0x210] sm:$0xff] %v1145_v57 }
 0x270   : > { %v1209_v5 = vpop.f32.mrf.mxu2  ;;  %v1274_v49 = vpop.f32.mrf.mxu3 }
 0x271   : > { %v1210_v24 = vadd.f32 %v1209_v5, %v3090_v28  ;;  %v1082_v55 = vpop.f32.mrf.mxu0  ;;  %v1147_v47 = vpop.f32.mrf.mxu1 }
 0x272   : > { %v1083_v41 = vadd.f32 %v1082_v55, %v3071_v51 }
 0x273   : > { %v1275_v10 = vadd.f32 %v1274_v49, %v1210_v24 }
 0x274   : > { %v1148_v34 = vadd.f32 %v1147_v47, %v1083_v41  ;;  %1341 = vmatmul.f32.gmra.mxu0 %v3248_v37  ;;  %1406 = vmatmul.f32.gmra.mxu1 %v3251_v19  ;;  %v3411_v41 = vld [vmem:[#allocation10] sm:$0x3f] }
 0x275   : > { %1876 = vst [vmem:[%s3103_s29 + $0x218] sm:$0xff] %v1275_v10  ;;  %1471 = vmatmul.f32.gmra.mxu2 %v3248_v37  ;;  %1536 = vmatmul.f32.gmra.mxu3 %v3251_v19  ;;  %v3414_v47 = vperm.slane %v3411_v41, 2 }
 0x276   : > { %1881 = vst [vmem:[%s3103_s29 + $0x240] sm:$0xff] %v1148_v34 }
 0x278   : > { %v1212_v58 = vpop.f32.mrf.mxu2  ;;  %v1277_v9 = vpop.f32.mrf.mxu3 }
 0x279   : > { %v1213_v30 = vadd.f32 %v1212_v58, %v3090_v28  ;;  %v1085_v27 = vpop.f32.mrf.mxu0  ;;  %v1150_v43 = vpop.f32.mrf.mxu1 }
 0x27a   : > { %v1086_v35 = vadd.f32 %v1085_v27, %v3071_v51  ;;  %v3423_v27 = vperm.slane %v3411_v41, 3 }
 0x27b   : > { %v1278_v12 = vadd.f32 %v1277_v9, %v1213_v30 }
 0x27c   : > { %v1151_v33 = vadd.f32 %v1150_v43, %v1086_v35  ;;  %1344 = vmatmul.f32.gmra.mxu0 %v3271_v14  ;;  %1409 = vmatmul.f32.gmra.mxu1 %v3274_v2 }
 0x27d   : > { %1882 = vst [vmem:[%s3103_s29 + $0x248] sm:$0xff] %v1278_v12  ;;  %1474 = vmatmul.f32.gmra.mxu2 %v3271_v14  ;;  %1539 = vmatmul.f32.gmra.mxu3 %v3274_v2 }
 0x27e   : > { %1887 = vst [vmem:[%s3103_s29 + $0x270] sm:$0xff] %v1151_v33 }
 0x280   : > { %v1215_v36 = vpop.f32.mrf.mxu2  ;;  %v1280_v56 = vpop.f32.mrf.mxu3 }
 0x281   : > { %v1216_v42 = vadd.f32 %v1215_v36, %v3090_v28  ;;  %v1088_v60 = vpop.f32.mrf.mxu0  ;;  %v1153_v39 = vpop.f32.mrf.mxu1 }
 0x282   : > { %v1089_v62 = vadd.f32 %v1088_v60, %v3071_v51 }
 0x283   : > { %v1281_v63 = vadd.f32 %v1280_v56, %v1216_v42 }
 0x284   : > { %v1154_v57 = vadd.f32 %v1153_v39, %v1089_v62  ;;  %1347 = vmatmul.f32.gmra.mxu0 %v3289_v38  ;;  %1412 = vmatmul.f32.gmra.mxu1 %v3293_v16 }
 0x285   : > { %1888 = vst [vmem:[%s3103_s29 + $0x278] sm:$0xff] %v1281_v63  ;;  %1477 = vmatmul.f32.gmra.mxu2 %v3289_v38  ;;  %1542 = vmatmul.f32.gmra.mxu3 %v3293_v16 }
 0x286   : > { %1893 = vst [vmem:[%s3103_s29 + $0x2a0] sm:$0xff] %v1154_v57 }
 0x288   : > { %v1218_v0 = vpop.f32.mrf.mxu2  ;;  %v1283_v32 = vpop.f32.mrf.mxu3 }
 0x289   : > { %v1219_v54 = vadd.f32 %v1218_v0, %v3090_v28  ;;  %v1091_v17 = vpop.f32.mrf.mxu0  ;;  %v1156_v24 = vpop.f32.mrf.mxu1 }
 0x28a   : > { %v1092_v5 = vadd.f32 %v1091_v17, %v3071_v51 }
 0x28b   : > { %v1284_v49 = vadd.f32 %v1283_v32, %v1219_v54 }
 0x28c   : > { %v1157_v55 = vadd.f32 %v1156_v24, %v1092_v5  ;;  %1350 = vmatmul.f32.gmra.mxu0 %v3307_v45  ;;  %1415 = vmatmul.f32.gmra.mxu1 %v3310_v8 }
 0x28d   : > { %1894 = vst [vmem:[%s3103_s29 + $0x2a8] sm:$0xff] %v1284_v49  ;;  %1480 = vmatmul.f32.gmra.mxu2 %v3307_v45  ;;  %1545 = vmatmul.f32.gmra.mxu3 %v3310_v8 }
 0x28e   : > { %1899 = vst [vmem:[%s3103_s29 + $0x2d0] sm:$0xff] %v1157_v55 }
 0x290   : > { %v1221_v51 = vpop.f32.mrf.mxu2  ;;  %v1286_v34 = vpop.f32.mrf.mxu3 }
 0x291   : > { %v1222_v10 = vadd.f32 %v1221_v51, %v3090_v28  ;;  %v1306_v13 = vpop.f32.mrf.mxu0  ;;  %v1371_v58 = vpop.f32.mrf.mxu1 }
 0x292   : > { %v1307_v61 = vadd.f32 %v1306_v13, %v3414_v47 }
 0x293   : > { %v1287_v30 = vadd.f32 %v1286_v34, %v1222_v10 }
 0x294   : > { %v1372_v9 = vadd.f32 %v1371_v58, %v1307_v61  ;;  %1565 = vmatmul.f32.vlgmr.msra.gmra.mxu0 %v2847_v20  ;;  %1630 = vmatmul.f32.vlgmr.msra.gmra.mxu1 %v2850_v7 }
 0x295   : > { %1900 = vst [vmem:[%s3103_s29 + $0x2d8] sm:$0xff] %v1287_v30  ;;  %1695 = vmatmul.f32.vlgmr.msra.gmra.mxu2 %v2847_v20  ;;  %1760 = vmatmul.f32.vlgmr.msra.gmra.mxu3 %v2850_v7 }
 0x296   : > { %1811 = vst [vmem:[%s3103_s29 + $0x10] sm:$0xff] %v1372_v9 }
 0x298   : > { %v1436_v28 = vpop.f32.mrf.mxu2  ;;  %v1501_v43 = vpop.f32.mrf.mxu3 }
 0x299   : > { %v1437_v35 = vadd.f32 %v1436_v28, %v3423_v27  ;;  %v1309_v12 = vpop.f32.mrf.mxu0  ;;  %v1374_v36 = vpop.f32.mrf.mxu1 }
 0x29a   : > { %v1310_v33 = vadd.f32 %v1309_v12, %v3414_v47 }
 0x29b   : > { %v1502_v42 = vadd.f32 %v1501_v43, %v1437_v35 }
 0x29c   : > { %v1375_v56 = vadd.f32 %v1374_v36, %v1310_v33  ;;  %1568 = vmatmul.f32.gmra.mxu0 %v2898_v22  ;;  %1633 = vmatmul.f32.gmra.mxu1 %v2901_v26 }
 0x29d   : > { %1812 = vst [vmem:[%s3103_s29 + $0x18] sm:$0xff] %v1502_v42  ;;  %1698 = vmatmul.f32.gmra.mxu2 %v2898_v22  ;;  %1763 = vmatmul.f32.gmra.mxu3 %v2901_v26 }
 0x29e   : > { %1817 = vst [vmem:[%s3103_s29 + $0x40] sm:$0xff] %v1375_v56 }
 0x2a0   : > { %v1439_v20 = vpop.f32.mrf.mxu2  ;;  %v1504_v60 = vpop.f32.mrf.mxu3 }
 0x2a1   : > { %v1440_v7 = vadd.f32 %v1439_v20, %v3423_v27  ;;  %v1312_v62 = vpop.f32.mrf.mxu0  ;;  %v1377_v63 = vpop.f32.mrf.mxu1 }
 0x2a2   : > { %v1313_v39 = vadd.f32 %v1312_v62, %v3414_v47 }
 0x2a3   : > { %v1505_v57 = vadd.f32 %v1504_v60, %v1440_v7 }
 0x2a4   : > { %v1378_v0 = vadd.f32 %v1377_v63, %v1313_v39  ;;  %1571 = vmatmul.f32.gmra.mxu0 %v2929_v18  ;;  %1636 = vmatmul.f32.gmra.mxu1 %v2936_v52 }
 0x2a5   : > { %1818 = vst [vmem:[%s3103_s29 + $0x48] sm:$0xff] %v1505_v57  ;;  %1701 = vmatmul.f32.gmra.mxu2 %v2929_v18  ;;  %1766 = vmatmul.f32.gmra.mxu3 %v2936_v52 }
 0x2a6   : > { %1823 = vst [vmem:[%s3103_s29 + $0x70] sm:$0xff] %v1378_v0 }
 0x2a8   : > { %v1442_v22 = vpop.f32.mrf.mxu2  ;;  %v1507_v54 = vpop.f32.mrf.mxu3 }
 0x2a9   : > { %v1443_v26 = vadd.f32 %v1442_v22, %v3423_v27  ;;  %v1315_v32 = vpop.f32.mrf.mxu0  ;;  %v1380_v5 = vpop.f32.mrf.mxu1 }
 0x2aa   : > { %v1316_v17 = vadd.f32 %v1315_v32, %v3414_v47 }
 0x2ab   : > { %v1508_v24 = vadd.f32 %v1507_v54, %v1443_v26 }
 0x2ac   : > { %v1381_v49 = vadd.f32 %v1380_v5, %v1316_v17  ;;  %1574 = vmatmul.f32.gmra.mxu0 %v2976_v11  ;;  %1639 = vmatmul.f32.gmra.mxu1 %v2980_v44 }
 0x2ad   : > { %1824 = vst [vmem:[%s3103_s29 + $0x78] sm:$0xff] %v1508_v24  ;;  %1704 = vmatmul.f32.gmra.mxu2 %v2976_v11  ;;  %1769 = vmatmul.f32.gmra.mxu3 %v2980_v44 }
 0x2ae   : > { %1829 = vst [vmem:[%s3103_s29 + $0xa0] sm:$0xff] %v1381_v49 }
 0x2b0   : > { %v1445_v18 = vpop.f32.mrf.mxu2  ;;  %v1510_v55 = vpop.f32.mrf.mxu3 }
 0x2b1   : > { %v1446_v52 = vadd.f32 %v1445_v18, %v3423_v27  ;;  %v1318_v51 = vpop.f32.mrf.mxu0  ;;  %v1383_v34 = vpop.f32.mrf.mxu1 }
 0x2b2   : > { %v1319_v10 = vadd.f32 %v1318_v51, %v3414_v47 }
 0x2b3   : > { %v1511_v13 = vadd.f32 %v1510_v55, %v1446_v52 }
 0x2b4   : > { %v1384_v61 = vadd.f32 %v1383_v34, %v1319_v10  ;;  %1577 = vmatmul.f32.gmra.mxu0 %v3001_v6  ;;  %1642 = vmatmul.f32.gmra.mxu1 %v3005_v29 }
 0x2b5   : > { %1830 = vst [vmem:[%s3103_s29 + $0xa8] sm:$0xff] %v1511_v13  ;;  %1707 = vmatmul.f32.gmra.mxu2 %v3001_v6  ;;  %1772 = vmatmul.f32.gmra.mxu3 %v3005_v29 }
 0x2b6   : > { %1835 = vst [vmem:[%s3103_s29 + $0xd0] sm:$0xff] %v1384_v61 }
 0x2b8   : > { %v1448_v11 = vpop.f32.mrf.mxu2  ;;  %v1513_v58 = vpop.f32.mrf.mxu3 }
 0x2b9   : > { %v1449_v44 = vadd.f32 %v1448_v11, %v3423_v27  ;;  %v1321_v30 = vpop.f32.mrf.mxu0  ;;  %v1386_v28 = vpop.f32.mrf.mxu1 }
 0x2ba   : > { %v1322_v9 = vadd.f32 %v1321_v30, %v3414_v47 }
 0x2bb   : > { %v1514_v35 = vadd.f32 %v1513_v58, %v1449_v44 }
 0x2bc   : > { %v1387_v43 = vadd.f32 %v1386_v28, %v1322_v9  ;;  %1580 = vmatmul.f32.gmra.mxu0 %v3022_v1  ;;  %1645 = vmatmul.f32.gmra.mxu1 %v3026_v53 }
 0x2bd   : > { %1836 = vst [vmem:[%s3103_s29 + $0xd8] sm:$0xff] %v1514_v35  ;;  %1710 = vmatmul.f32.gmra.mxu2 %v3022_v1  ;;  %1775 = vmatmul.f32.gmra.mxu3 %v3026_v53 }
 0x2be   : > { %1841 = vst [vmem:[%s3103_s29 + $0x100] sm:$0xff] %v1387_v43 }
 0x2c0   : > { %v1451_v6 = vpop.f32.mrf.mxu2  ;;  %v1516_v12 = vpop.f32.mrf.mxu3 }
 0x2c1   : > { %v1452_v29 = vadd.f32 %v1451_v6, %v3423_v27  ;;  %v1324_v33 = vpop.f32.mrf.mxu0  ;;  %v1389_v42 = vpop.f32.mrf.mxu1 }
 0x2c2   : > { %v1325_v36 = vadd.f32 %v1324_v33, %v3414_v47 }
 0x2c3   : > { %v1517_v56 = vadd.f32 %v1516_v12, %v1452_v29 }
 0x2c4   : > { %v1390_v20 = vadd.f32 %v1389_v42, %v1325_v36  ;;  %1583 = vmatmul.f32.gmra.mxu0 %v3038_v25  ;;  %1648 = vmatmul.f32.gmra.mxu1 %v3042_v48 }
 0x2c5   : > { %1842 = vst [vmem:[%s3103_s29 + $0x108] sm:$0xff] %v1517_v56  ;;  %1713 = vmatmul.f32.gmra.mxu2 %v3038_v25  ;;  %1778 = vmatmul.f32.gmra.mxu3 %v3042_v48 }
 0x2c6   : > { %1847 = vst [vmem:[%s3103_s29 + $0x130] sm:$0xff] %v1390_v20 }
 0x2c8   : > { %v1454_v1 = vpop.f32.mrf.mxu2  ;;  %v1519_v7 = vpop.f32.mrf.mxu3 }
 0x2c9   : > { %v1455_v53 = vadd.f32 %v1454_v1, %v3423_v27  ;;  %v1327_v60 = vpop.f32.mrf.mxu0  ;;  %v1392_v39 = vpop.f32.mrf.mxu1 }
 0x2ca   : > { %v1328_v62 = vadd.f32 %v1327_v60, %v3414_v47 }
 0x2cb   : > { %v1520_v63 = vadd.f32 %v1519_v7, %v1455_v53 }
 0x2cc   : > { %v1393_v57 = vadd.f32 %v1392_v39, %v1328_v62  ;;  %1586 = vmatmul.f32.gmra.mxu0 %v3052_v21  ;;  %1651 = vmatmul.f32.gmra.mxu1 %v3055_v50 }
 0x2cd   : > { %1848 = vst [vmem:[%s3103_s29 + $0x138] sm:$0xff] %v1520_v63  ;;  %1716 = vmatmul.f32.gmra.mxu2 %v3052_v21  ;;  %1781 = vmatmul.f32.gmra.mxu3 %v3055_v50 }
 0x2ce   : > { %1853 = vst [vmem:[%s3103_s29 + $0x160] sm:$0xff] %v1393_v57 }
 0x2d0   : > { %v1457_v25 = vpop.f32.mrf.mxu2  ;;  %v1522_v0 = vpop.f32.mrf.mxu3 }
 0x2d1   : > { %v1458_v48 = vadd.f32 %v1457_v25, %v3423_v27  ;;  %v1330_v22 = vpop.f32.mrf.mxu0  ;;  %v1395_v54 = vpop.f32.mrf.mxu1 }
 0x2d2   : > { %v1331_v26 = vadd.f32 %v1330_v22, %v3414_v47 }
 0x2d3   : > { %v1523_v32 = vadd.f32 %v1522_v0, %v1458_v48 }
 0x2d4   : > { %v1396_v17 = vadd.f32 %v1395_v54, %v1331_v26  ;;  %1589 = vmatmul.f32.gmra.mxu0 %v3093_v46  ;;  %1654 = vmatmul.f32.gmra.mxu1 %v3096_v15 }
 0x2d5   : > { %1854 = vst [vmem:[%s3103_s29 + $0x168] sm:$0xff] %v1523_v32  ;;  %1719 = vmatmul.f32.gmra.mxu2 %v3093_v46  ;;  %1784 = vmatmul.f32.gmra.mxu3 %v3096_v15 }
 0x2d6   : > { %1859 = vst [vmem:[%s3103_s29 + $0x190] sm:$0xff] %v1396_v17 }
 0x2d8   : > { %v1460_v21 = vpop.f32.mrf.mxu2  ;;  %v1525_v5 = vpop.f32.mrf.mxu3 }
 0x2d9   : > { %v1461_v50 = vadd.f32 %v1460_v21, %v3423_v27  ;;  %v1333_v24 = vpop.f32.mrf.mxu0  ;;  %v1398_v18 = vpop.f32.mrf.mxu1 }
 0x2da   : > { %v1334_v49 = vadd.f32 %v1333_v24, %v3414_v47 }
 0x2db   : > { %v1526_v52 = vadd.f32 %v1525_v5, %v1461_v50 }
 0x2dc   : > { %v1399_v55 = vadd.f32 %v1398_v18, %v1334_v49  ;;  %1592 = vmatmul.f32.gmra.mxu0 %v3670_v4  ;;  %1657 = vmatmul.f32.gmra.mxu1 %v3671_v40 }
 0x2dd   : > { %1860 = vst [vmem:[%s3103_s29 + $0x198] sm:$0xff] %v1526_v52  ;;  %1722 = vmatmul.f32.gmra.mxu2 %v3670_v4  ;;  %1787 = vmatmul.f32.gmra.mxu3 %v3671_v40 }
 0x2de   : > { %1865 = vst [vmem:[%s3103_s29 + $0x1c0] sm:$0xff] %v1399_v55 }
 0x2e0   : > { %v1463_v46 = vpop.f32.mrf.mxu2  ;;  %v1528_v51 = vpop.f32.mrf.mxu3 }
 0x2e1   : > { %v1464_v15 = vadd.f32 %v1463_v46, %v3423_v27  ;;  %v1336_v10 = vpop.f32.mrf.mxu0  ;;  %v1401_v13 = vpop.f32.mrf.mxu1 }
 0x2e2   : > { %v1337_v34 = vadd.f32 %v1336_v10, %v3414_v47 }
 0x2e3   : > { %v1529_v61 = vadd.f32 %v1528_v51, %v1464_v15 }
 0x2e4   : > { %v1402_v11 = vadd.f32 %v1401_v13, %v1337_v34  ;;  %1595 = vmatmul.f32.gmra.mxu0 %v3183_v31  ;;  %1660 = vmatmul.f32.gmra.mxu1 %v3188_v59 }
 0x2e5   : > { %1866 = vst [vmem:[%s3103_s29 + $0x1c8] sm:$0xff] %v1529_v61  ;;  %1725 = vmatmul.f32.gmra.mxu2 %v3183_v31  ;;  %1790 = vmatmul.f32.gmra.mxu3 %v3188_v59 }
 0x2e6   : > { %1871 = vst [vmem:[%s3103_s29 + $0x1f0] sm:$0xff] %v1402_v11 }
 0x2e8   : > { %v1466_v4 = vpop.f32.mrf.mxu2  ;;  %v1531_v44 = vpop.f32.mrf.mxu3 }
 0x2e9   : > { %v1467_v40 = vadd.f32 %v1466_v4, %v3423_v27  ;;  %v1339_v58 = vpop.f32.mrf.mxu0  ;;  %v1404_v9 = vpop.f32.mrf.mxu1 }
 0x2ea   : > { %v1340_v30 = vadd.f32 %v1339_v58, %v3414_v47 }
 0x2eb   : > { %v1532_v28 = vadd.f32 %v1531_v44, %v1467_v40 }
 0x2ec   : > { %v1405_v35 = vadd.f32 %v1404_v9, %v1340_v30  ;;  %1598 = vmatmul.f32.gmra.mxu0 %v3220_v3  ;;  %1663 = vmatmul.f32.gmra.mxu1 %v3223_v23 }
 0x2ed   : > { %1872 = vst [vmem:[%s3103_s29 + $0x1f8] sm:$0xff] %v1532_v28  ;;  %1728 = vmatmul.f32.gmra.mxu2 %v3220_v3  ;;  %1793 = vmatmul.f32.gmra.mxu3 %v3223_v23 }
 0x2ee   : > { %1877 = vst [vmem:[%s3103_s29 + $0x220] sm:$0xff] %v1405_v35 }
 0x2f0   : > { %v1469_v31 = vpop.f32.mrf.mxu2  ;;  %v1534_v43 = vpop.f32.mrf.mxu3 }
 0x2f1   : > { %v1470_v59 = vadd.f32 %v1469_v31, %v3423_v27  ;;  %v1342_v6 = vpop.f32.mrf.mxu0  ;;  %v1407_v12 = vpop.f32.mrf.mxu1 }
 0x2f2   : > { %v1343_v29 = vadd.f32 %v1342_v6, %v3414_v47 }
 0x2f3   : > { %v1535_v33 = vadd.f32 %v1534_v43, %v1470_v59 }
 0x2f4   : > { %v1408_v36 = vadd.f32 %v1407_v12, %v1343_v29  ;;  %1601 = vmatmul.f32.gmra.mxu0 %v3248_v37  ;;  %1666 = vmatmul.f32.gmra.mxu1 %v3251_v19 }
 0x2f5   : > { %1878 = vst [vmem:[%s3103_s29 + $0x228] sm:$0xff] %v1535_v33  ;;  %1731 = vmatmul.f32.gmra.mxu2 %v3248_v37  ;;  %1796 = vmatmul.f32.gmra.mxu3 %v3251_v19 }
 0x2f6   : > { %1883 = vst [vmem:[%s3103_s29 + $0x250] sm:$0xff] %v1408_v36 }
 0x2f8   : > { %v1472_v3 = vpop.f32.mrf.mxu2  ;;  %v1537_v42 = vpop.f32.mrf.mxu3 }
 0x2f9   : > { %v1473_v23 = vadd.f32 %v1472_v3, %v3423_v27  ;;  %v1345_v56 = vpop.f32.mrf.mxu0  ;;  %v1410_v1 = vpop.f32.mrf.mxu1 }
 0x2fa   : > { %v1346_v20 = vadd.f32 %v1345_v56, %v3414_v47 }
 0x2fb   : > { %v1538_v53 = vadd.f32 %v1537_v42, %v1473_v23 }
 0x2fc   : > { %v1411_v7 = vadd.f32 %v1410_v1, %v1346_v20  ;;  %1604 = vmatmul.f32.gmra.mxu0 %v3271_v14  ;;  %1669 = vmatmul.f32.gmra.mxu1 %v3274_v2 }
 0x2fd   : > { %1884 = vst [vmem:[%s3103_s29 + $0x258] sm:$0xff] %v1538_v53  ;;  %1734 = vmatmul.f32.gmra.mxu2 %v3271_v14  ;;  %1799 = vmatmul.f32.gmra.mxu3 %v3274_v2 }
 0x2fe   : > { %1889 = vst [vmem:[%s3103_s29 + $0x280] sm:$0xff] %v1411_v7 }
 0x300   : > { %v1475_v37 = vpop.f32.mrf.mxu2  ;;  %v1540_v60 = vpop.f32.mrf.mxu3 }
 0x301   : > { %v1476_v19 = vadd.f32 %v1475_v37, %v3423_v27  ;;  %v1348_v62 = vpop.f32.mrf.mxu0  ;;  %v1413_v63 = vpop.f32.mrf.mxu1 }
 0x302   : > { %v1349_v39 = vadd.f32 %v1348_v62, %v3414_v47 }
 0x303   : > { %v1541_v57 = vadd.f32 %v1540_v60, %v1476_v19 }
 0x304   : > { %v1414_v25 = vadd.f32 %v1413_v63, %v1349_v39  ;;  %1607 = vmatmul.f32.gmra.mxu0 %v3289_v38  ;;  %1672 = vmatmul.f32.gmra.mxu1 %v3293_v16 }
 0x305   : > { %1890 = vst [vmem:[%s3103_s29 + $0x288] sm:$0xff] %v1541_v57  ;;  %1737 = vmatmul.f32.gmra.mxu2 %v3289_v38  ;;  %1802 = vmatmul.f32.gmra.mxu3 %v3293_v16  ;;  %v3548_v38 = vperm.slane %v3411_v41, 4 }
 0x306   : > { %1895 = vst [vmem:[%s3103_s29 + $0x2b0] sm:$0xff] %v1414_v25 }
 0x308   : > { %v1478_v14 = vpop.f32.mrf.mxu2  ;;  %v1543_v48 = vpop.f32.mrf.mxu3 }
 0x309   : > { %v1479_v2 = vadd.f32 %v1478_v14, %v3423_v27  ;;  %v1351_v0 = vpop.f32.mrf.mxu0  ;;  %v1416_v26 = vpop.f32.mrf.mxu1 }
 0x30a   : > { %v1352_v22 = vadd.f32 %v1351_v0, %v3414_v47 }
 0x30b   : > { %v1544_v54 = vadd.f32 %v1543_v48, %v1479_v2 }
 0x30c   : > { %v1417_v32 = vadd.f32 %v1416_v26, %v1352_v22  ;;  %1610 = vmatmul.f32.gmra.mxu0 %v3307_v45  ;;  %1675 = vmatmul.f32.gmra.mxu1 %v3310_v8 }
 0x30d   : > { %1896 = vst [vmem:[%s3103_s29 + $0x2b8] sm:$0xff] %v1544_v54  ;;  %1740 = vmatmul.f32.gmra.mxu2 %v3307_v45  ;;  %1805 = vmatmul.f32.gmra.mxu3 %v3310_v8  ;;  %v3554_v45 = vperm.slane %v3411_v41, 5 }
 0x30e   : > { %1901 = vst [vmem:[%s3103_s29 + $0x2e0] sm:$0xff] %v1417_v32 }
 0x310   : > { %v1481_v16 = vpop.f32.mrf.mxu2  ;;  %v1546_v17 = vpop.f32.mrf.mxu3 }
 0x311   : > { %v1482_v47 = vadd.f32 %v1481_v16, %v3423_v27  ;;  %v1566_v21 = vpop.f32.mrf.mxu0  ;;  %v1631_v5 = vpop.f32.mrf.mxu1 }
 0x312   : > { %v1567_v50 = vadd.f32 %v1566_v21, %v3548_v38 }
 0x313   : > { %v1547_v24 = vadd.f32 %v1546_v17, %v1482_v47 }
 0x314   : > { %v1632_v49 = vadd.f32 %v1631_v5, %v1567_v50 }
 0x315   : > { %1902 = vst [vmem:[%s3103_s29 + $0x2e8] sm:$0xff] %v1547_v24 }
 0x316   : > { %1813 = vst [vmem:[%s3103_s29 + $0x20] sm:$0xff] %v1632_v49 }
 0x318   : > { %v1696_v8 = vpop.f32.mrf.mxu2  ;;  %v1761_v52 = vpop.f32.mrf.mxu3 }
 0x319   : > { %v1697_v18 = vadd.f32 %v1696_v8, %v3554_v45  ;;  %v1569_v27 = vpop.f32.mrf.mxu0  ;;  %v1634_v46 = vpop.f32.mrf.mxu1 }
 0x31a   : > { %v1570_v55 = vadd.f32 %v1569_v27, %v3548_v38 }
 0x31b   : > { %v1762_v15 = vadd.f32 %v1761_v52, %v1697_v18 }
 0x31c   : > { %v1635_v51 = vadd.f32 %v1634_v46, %v1570_v55 }
 0x31d   : > { %1814 = vst [vmem:[%s3103_s29 + $0x28] sm:$0xff] %v1762_v15 }
 0x31e   : > { %1819 = vst [vmem:[%s3103_s29 + $0x50] sm:$0xff] %v1635_v51 }
 0x320   : > { %v1699_v10 = vpop.f32.mrf.mxu2  ;;  %v1764_v41 = vpop.f32.mrf.mxu3 }
 0x321   : > { %v1700_v34 = vadd.f32 %v1699_v10, %v3554_v45  ;;  %v1572_v13 = vpop.f32.mrf.mxu0  ;;  %v1637_v11 = vpop.f32.mrf.mxu1 }
 0x322   : > { %v1573_v61 = vadd.f32 %v1572_v13, %v3548_v38 }
 0x323   : > { %v1765_v4 = vadd.f32 %v1764_v41, %v1700_v34 }
 0x324   : > { %v1638_v40 = vadd.f32 %v1637_v11, %v1573_v61 }
 0x325   : > { %1820 = vst [vmem:[%s3103_s29 + $0x58] sm:$0xff] %v1765_v4 }
 0x326   : > { %1825 = vst [vmem:[%s3103_s29 + $0x80] sm:$0xff] %v1638_v40 }
 0x328   : > { %v1702_v44 = vpop.f32.mrf.mxu2  ;;  %v1767_v30 = vpop.f32.mrf.mxu3 }
 0x329   : > { %v1703_v58 = vadd.f32 %v1702_v44, %v3554_v45  ;;  %v1575_v9 = vpop.f32.mrf.mxu0  ;;  %v1640_v35 = vpop.f32.mrf.mxu1 }
 0x32a   : > { %v1576_v28 = vadd.f32 %v1575_v9, %v3548_v38 }
 0x32b   : > { %v1768_v31 = vadd.f32 %v1767_v30, %v1703_v58 }
 0x32c   : > { %v1641_v59 = vadd.f32 %v1640_v35, %v1576_v28 }
 0x32d   : > { %1826 = vst [vmem:[%s3103_s29 + $0x88] sm:$0xff] %v1768_v31 }
 0x32e   : > { %1831 = vst [vmem:[%s3103_s29 + $0xb0] sm:$0xff] %v1641_v59 }
 0x330   : > { %v1705_v43 = vpop.f32.mrf.mxu2  ;;  %v1770_v29 = vpop.f32.mrf.mxu3 }
 0x331   : > { %v1706_v6 = vadd.f32 %v1705_v43, %v3554_v45  ;;  %v1578_v12 = vpop.f32.mrf.mxu0  ;;  %v1643_v36 = vpop.f32.mrf.mxu1 }
 0x332   : > { %v1579_v33 = vadd.f32 %v1578_v12, %v3548_v38 }
 0x333   : > { %v1771_v3 = vadd.f32 %v1770_v29, %v1706_v6 }
 0x334   : > { %v1644_v23 = vadd.f32 %v1643_v36, %v1579_v33 }
 0x335   : > { %1832 = vst [vmem:[%s3103_s29 + $0xb8] sm:$0xff] %v1771_v3 }
 0x336   : > { %1837 = vst [vmem:[%s3103_s29 + $0xe0] sm:$0xff] %v1644_v23 }
 0x338   : > { %v1708_v42 = vpop.f32.mrf.mxu2  ;;  %v1773_v20 = vpop.f32.mrf.mxu3 }
 0x339   : > { %v1709_v56 = vadd.f32 %v1708_v42, %v3554_v45  ;;  %v1581_v1 = vpop.f32.mrf.mxu0  ;;  %v1646_v7 = vpop.f32.mrf.mxu1 }
 0x33a   : > { %v1582_v53 = vadd.f32 %v1581_v1, %v3548_v38 }
 0x33b   : > { %v1774_v37 = vadd.f32 %v1773_v20, %v1709_v56 }
 0x33c   : > { %v1647_v19 = vadd.f32 %v1646_v7, %v1582_v53 }
 0x33d   : > { %1838 = vst [vmem:[%s3103_s29 + $0xe8] sm:$0xff] %v1774_v37 }
 0x33e   : > { %1843 = vst [vmem:[%s3103_s29 + $0x110] sm:$0xff] %v1647_v19 }
 0x340   : > { %v1711_v60 = vpop.f32.mrf.mxu2  ;;  %v1776_v39 = vpop.f32.mrf.mxu3 }
 0x341   : > { %v1712_v62 = vadd.f32 %v1711_v60, %v3554_v45  ;;  %v1584_v63 = vpop.f32.mrf.mxu0  ;;  %v1649_v25 = vpop.f32.mrf.mxu1 }
 0x342   : > { %v1585_v57 = vadd.f32 %v1584_v63, %v3548_v38 }
 0x343   : > { %v1777_v14 = vadd.f32 %v1776_v39, %v1712_v62 }
 0x344   : > { %v1650_v2 = vadd.f32 %v1649_v25, %v1585_v57 }
 0x345   : > { %1844 = vst [vmem:[%s3103_s29 + $0x118] sm:$0xff] %v1777_v14 }
 0x346   : > { %1849 = vst [vmem:[%s3103_s29 + $0x140] sm:$0xff] %v1650_v2 }
 0x348   : > { %v1714_v48 = vpop.f32.mrf.mxu2  ;;  %v1779_v22 = vpop.f32.mrf.mxu3 }
 0x349   : > { %v1715_v0 = vadd.f32 %v1714_v48, %v3554_v45  ;;  %v1587_v26 = vpop.f32.mrf.mxu0  ;;  %v1652_v32 = vpop.f32.mrf.mxu1 }
 0x34a   : > { %v1588_v54 = vadd.f32 %v1587_v26, %v3548_v38 }
 0x34b   : > { %v1780_v16 = vadd.f32 %v1779_v22, %v1715_v0 }
 0x34c   : > { %v1653_v47 = vadd.f32 %v1652_v32, %v1588_v54 }
 0x34d   : > { %1850 = vst [vmem:[%s3103_s29 + $0x148] sm:$0xff] %v1780_v16 }
 0x34e   : > { %1855 = vst [vmem:[%s3103_s29 + $0x170] sm:$0xff] %v1653_v47 }
 0x350   : > { %v1717_v17 = vpop.f32.mrf.mxu2  ;;  %v1782_v50 = vpop.f32.mrf.mxu3 }
 0x351   : > { %v1718_v21 = vadd.f32 %v1717_v17, %v3554_v45  ;;  %v1590_v5 = vpop.f32.mrf.mxu0  ;;  %v1655_v49 = vpop.f32.mrf.mxu1 }
 0x352   : > { %v1591_v24 = vadd.f32 %v1590_v5, %v3548_v38 }
 0x353   : > { %v1783_v8 = vadd.f32 %v1782_v50, %v1718_v21 }
 0x354   : > { %v1656_v18 = vadd.f32 %v1655_v49, %v1591_v24 }
 0x355   : > { %1856 = vst [vmem:[%s3103_s29 + $0x178] sm:$0xff] %v1783_v8 }
 0x356   : > { %1861 = vst [vmem:[%s3103_s29 + $0x1a0] sm:$0xff] %v1656_v18 }
 0x358   : > { %v1720_v52 = vpop.f32.mrf.mxu2  ;;  %v1785_v55 = vpop.f32.mrf.mxu3 }
 0x359   : > { %v1721_v27 = vadd.f32 %v1720_v52, %v3554_v45  ;;  %v1593_v46 = vpop.f32.mrf.mxu0  ;;  %v1658_v51 = vpop.f32.mrf.mxu1 }
 0x35a   : > { %v1594_v15 = vadd.f32 %v1593_v46, %v3548_v38 }
 0x35b   : > { %v1786_v10 = vadd.f32 %v1785_v55, %v1721_v27 }
 0x35c   : > { %v1659_v34 = vadd.f32 %v1658_v51, %v1594_v15 }
 0x35d   : > { %1862 = vst [vmem:[%s3103_s29 + $0x1a8] sm:$0xff] %v1786_v10 }
 0x35e   : > { %1867 = vst [vmem:[%s3103_s29 + $0x1d0] sm:$0xff] %v1659_v34 }
 0x360   : > { %v1723_v41 = vpop.f32.mrf.mxu2  ;;  %v1788_v61 = vpop.f32.mrf.mxu3 }
 0x361   : > { %v1724_v13 = vadd.f32 %v1723_v41, %v3554_v45  ;;  %v1596_v11 = vpop.f32.mrf.mxu0  ;;  %v1661_v40 = vpop.f32.mrf.mxu1 }
 0x362   : > { %v1597_v4 = vadd.f32 %v1596_v11, %v3548_v38 }
 0x363   : > { %v1789_v44 = vadd.f32 %v1788_v61, %v1724_v13 }
 0x364   : > { %v1662_v58 = vadd.f32 %v1661_v40, %v1597_v4 }
 0x365   : > { %1868 = vst [vmem:[%s3103_s29 + $0x1d8] sm:$0xff] %v1789_v44 }
 0x366   : > { %1873 = vst [vmem:[%s3103_s29 + $0x200] sm:$0xff] %v1662_v58 }
 0x368   : > { %v1726_v30 = vpop.f32.mrf.mxu2  ;;  %v1791_v28 = vpop.f32.mrf.mxu3 }
 0x369   : > { %v1727_v9 = vadd.f32 %v1726_v30, %v3554_v45  ;;  %v1599_v35 = vpop.f32.mrf.mxu0  ;;  %v1664_v59 = vpop.f32.mrf.mxu1 }
 0x36a   : > { %v1600_v31 = vadd.f32 %v1599_v35, %v3548_v38 }
 0x36b   : > { %v1792_v43 = vadd.f32 %v1791_v28, %v1727_v9 }
 0x36c   : > { %v1665_v6 = vadd.f32 %v1664_v59, %v1600_v31 }
 0x36d   : > { %1874 = vst [vmem:[%s3103_s29 + $0x208] sm:$0xff] %v1792_v43 }
 0x36e   : > { %1879 = vst [vmem:[%s3103_s29 + $0x230] sm:$0xff] %v1665_v6 }
 0x370   : > { %v1729_v29 = vpop.f32.mrf.mxu2  ;;  %v1794_v33 = vpop.f32.mrf.mxu3 }
 0x371   : > { %v1730_v12 = vadd.f32 %v1729_v29, %v3554_v45  ;;  %v1602_v36 = vpop.f32.mrf.mxu0  ;;  %v1667_v23 = vpop.f32.mrf.mxu1 }
 0x372   : > { %v1603_v3 = vadd.f32 %v1602_v36, %v3548_v38 }
 0x373   : > { %v1795_v42 = vadd.f32 %v1794_v33, %v1730_v12 }
 0x374   : > { %v1668_v56 = vadd.f32 %v1667_v23, %v1603_v3 }
 0x375   : > { %1880 = vst [vmem:[%s3103_s29 + $0x238] sm:$0xff] %v1795_v42 }
 0x376   : > { %1885 = vst [vmem:[%s3103_s29 + $0x260] sm:$0xff] %v1668_v56 }
 0x378   : > { %v1732_v20 = vpop.f32.mrf.mxu2  ;;  %v1797_v53 = vpop.f32.mrf.mxu3 }
 0x379   : > { %v1733_v1 = vadd.f32 %v1732_v20, %v3554_v45  ;;  %v1605_v7 = vpop.f32.mrf.mxu0  ;;  %v1670_v19 = vpop.f32.mrf.mxu1 }
 0x37a   : > { %v1606_v37 = vadd.f32 %v1605_v7, %v3548_v38 }
 0x37b   : > { %v1798_v60 = vadd.f32 %v1797_v53, %v1733_v1 }
 0x37c   : > { %v1671_v62 = vadd.f32 %v1670_v19, %v1606_v37 }
 0x37d   : > { %1886 = vst [vmem:[%s3103_s29 + $0x268] sm:$0xff] %v1798_v60 }
 0x37e   : > { %1891 = vst [vmem:[%s3103_s29 + $0x290] sm:$0xff] %v1671_v62 }
 0x380   : > { %v1735_v39 = vpop.f32.mrf.mxu2  ;;  %v1800_v57 = vpop.f32.mrf.mxu3 }
 0x381   : > { %v1736_v63 = vadd.f32 %v1735_v39, %v3554_v45  ;;  %v1608_v25 = vpop.f32.mrf.mxu0  ;;  %v1673_v2 = vpop.f32.mrf.mxu1 }
 0x382   : > { %v1609_v14 = vadd.f32 %v1608_v25, %v3548_v38 }
 0x383   : > { %v1801_v48 = vadd.f32 %v1800_v57, %v1736_v63 }
 0x384   : > { %v1674_v0 = vadd.f32 %v1673_v2, %v1609_v14 }
 0x385   : > { %1892 = vst [vmem:[%s3103_s29 + $0x298] sm:$0xff] %v1801_v48 }
 0x386   : > { %1897 = vst [vmem:[%s3103_s29 + $0x2c0] sm:$0xff] %v1674_v0 }
 0x388   : > { %v1738_v22 = vpop.f32.mrf.mxu2  ;;  %v1803_v54 = vpop.f32.mrf.mxu3 }
 0x389   : > { %v1739_v26 = vadd.f32 %v1738_v22, %v3554_v45  ;;  %v1611_v32 = vpop.f32.mrf.mxu0  ;;  %v1676_v17 = vpop.f32.mrf.mxu1 }
 0x38a   : > { %v1612_v16 = vadd.f32 %v1611_v32, %v3548_v38 }
 0x38b   : > { %v1804_v47 = vadd.f32 %v1803_v54, %v1739_v26 }
 0x38c   : > { %v1677_v21 = vadd.f32 %v1676_v17, %v1612_v16 }
 0x38d   : > { %1898 = vst [vmem:[%s3103_s29 + $0x2c8] sm:$0xff] %v1804_v47 }
 0x38e   : > { %1903 = vst [vmem:[%s3103_s29 + $0x2f0] sm:$0xff] %v1677_v21 }
 0x390   : > { %v1741_v50 = vpop.f32.mrf.mxu2  ;;  %v1806_v24 = vpop.f32.mrf.mxu3 }
 0x391   : > { %v1742_v5 = vadd.f32 %v1741_v50, %v3554_v45 }
 0x393   : > { %v1807_v38 = vadd.f32 %v1806_v24, %v1742_v5 }
 0x395   : > { %1904 = vst [vmem:[%s3103_s29 + $0x2f8] sm:$0xff] %v1807_v38 }
 0x396   : > { %2365 = shalt.err (!%p2362_p10)
}
 0x397   : > { %s2423_s26 = smov 768   ;;  %s2424_s24 = smov 48  }
 0x398   : > { %2077 = dma.vmem_to_hbm [thread:$0]  (%p2538_p0), %s1920_s10, 12288, %s1922_s22, %s1906_s15, %s2423_s26, %s2423_s26, %s2424_s24  }
 0x399 PF: > { %p2109_p11 = scmp.ge.s32.totalorder %s2412_s21, 2  ;;  %s1936_s29 = sand.u32 1, %s2400_s18  }
 0x39a   : > { %s1937_s27 = scalar_lea.sflag [#allocation4], %s1936_s29 }
 0x39b   : > { %p2097_p12 = pnand %p2109_p11, %p2490_p6 }
 0x39d   : > { %p2098_p13 = pneg %p2097_p12 }
 0x39f   : > { %2395 = dma.done.wait (%p2098_p13), %s1937_s27, 12288  }
 0x3a0   : > { %2397 = vsyncadd (%p2098_p13), %s1937_s27, 4294955008  ;;  %p20_p3 = scmp.ge.s32.totalorder %s2528_s8, 6   ;;  %s3672_s18 = smov %s2404_s19 }
 0x3a1   : > { %s3673_s19 = smov %s2408_s20  ;;  %s3674_s20 = smov %s2544_s13 }
 0x3a2   : > { %s3675_s21 = smov %s2528_s8  ;;  %22 = sbr.rel (!%p20_p3) target bundleno = 7 (0x7), region = 101 }
 0x3a7   :  { %1943 = vsyncpa [#allocation3], 1 }
 0x3a8   :  { %1945 = vsyncpa [#allocation3 + $0x1], 1 }
 0x3a9   :  { %1946 = vsyncpa [#allocation6], 1 }
 0x3aa   :  { %1947 = vsyncpa [#allocation9], 1 }
 0x3ab   :  { %1948 = vsyncpa [#allocation4], 1 }
 0x3ac   :  { %1950 = vsyncpa [#allocation4 + $0x1], 1 }

</bundles_post_ra>
